<compile_context>
chip_gen: v6e
topology: v6e:2x2x1
jax: 0.10.0
libtpu: 0.0.40
codegen_flags: <defaults>
</compile_context>

<pallas_src>
import functools

import numpy as np
import jax
import jax.numpy as jnp
from jax.experimental import pallas as pl
from jax.experimental.pallas import tpu as pltpu

# ----------------------------- synthetic config ------------------------------
IMG = 16          # input spatial size (already at "model resolution")
PATCH = 8         # patch size
C_IN = 3          # RGB
D = 32            # hidden size
HEADS = 4
DH = D // HEADS
LAYERS = 2
MLP = 4 * D
B = 2             # batch
N_VIEW = 2        # number of reference views per batch element

GRID_HW = IMG // PATCH
NUM_PATCH = GRID_HW * GRID_HW
L = NUM_PATCH + 1                          # +1 CLS token
LP = ((L + 7) // 8) * 8                    # L padded to a sublane multiple
K_PATCH = C_IN * PATCH * PATCH
K_PAD = ((K_PATCH + 127) // 128) * 128     # patch contraction padded to 128 lanes
EPS = 1e-6

IMAGENET_MEAN = jnp.array([0.485, 0.456, 0.406], jnp.float32)
IMAGENET_STD = jnp.array([0.229, 0.224, 0.225], jnp.float32)


# --------------------------------- kernel ------------------------------------
def _layernorm(x, w, b):
    # x: (T, D) f32, w/b: (1, D) f32 — all elementwise math kept in f32 (v5e).
    mu = jnp.mean(x, axis=-1, keepdims=True)
    var = jnp.mean((x - mu) ** 2, axis=-1, keepdims=True)
    return (x - mu) * jax.lax.rsqrt(var + EPS) * w + b


def _gelu(x):
    # tanh-approximate GELU (EUP tanh); reference uses the same approximation.
    return jax.nn.gelu(x, approximate=True)


def _dino_layer_kernel(patches_ref, pw_ref, embadd_ref, lnf_ref,
                       wqkv_ref, bqkv_ref, wo_ref, w1_ref, b1_ref, w2_ref,
                       vecd_ref, o_ref, x_ref, *, seqs):
    # patches_ref: (1, S, LP, K_PAD)   zero rows for CLS + padding
    # pw_ref:      (K_PAD, D)   bf16   patch-embed weight (zero-padded rows)
    # embadd_ref:  (LP, D)      f32    cls+pos / patch_b+pos per token row
    # lnf_ref:     (2, D)       f32    final layernorm weight / bias
    # wqkv_ref:    (1, D, 3D)   bf16   this layer's fused Q,K,V weights
    # bqkv_ref:    (1, 1, 3D)   f32
    # wo_ref:      (1, HEADS, DH, D) bf16   per-head output projection
    # w1_ref:      (1, D, MLP)  bf16   b1_ref: (1, 1, MLP) f32
    # w2_ref:      (1, MLP, D)  bf16
    # vecd_ref:    (1, 8, D)    f32    rows: ln1w,ln1b,bo,ls1,ln2w,ln2b,b2,ls2
    # o_ref:       (1, S*LP, D) f32    written only on the last layer
    # x_ref:       (S*LP, D)    f32    activation carried across the layer axis
    layer = pl.program_id(1)
    t = seqs * LP
    bf = jnp.bfloat16

    # ---- layer 0: embeddings (patch embed + CLS / position add) -------------
    @pl.when(layer == 0)
    def _():
        p = patches_ref[0].reshape(t, K_PAD).astype(bf)
        tok = jnp.dot(p, pw_ref[...], preferred_element_type=jnp.float32)
        tok = tok.reshape(seqs, LP, D) + embadd_ref[...][None]
        x_ref[...] = tok.reshape(t, D)

    # ---- one transformer layer (weights streamed for this grid step) --------
    vec = vecd_ref[0]                                  # (8, D)
    ln1w, ln1b = vec[0:1], vec[1:2]
    bo, ls1 = vec[2:3], vec[3:4]
    ln2w, ln2b = vec[4:5], vec[5:6]
    b2v, ls2 = vec[6:7], vec[7:8]

    x = x_ref[...]                                     # (T, D) f32

    # --- attention block ---
    h = _layernorm(x, ln1w, ln1b).astype(bf)
    qkv = jnp.dot(h, wqkv_ref[0],
                  preferred_element_type=jnp.float32) + bqkv_ref[0]   # (T, 3D)

    # key-padding mask generated in-kernel (rows L..LP-1 are padding tokens)
    kmask = jnp.where(
        jax.lax.broadcasted_iota(jnp.int32, (1, 1, LP), 2) < L, 0.0, -1e30)

    scale = 1.0 / (DH ** 0.5)
    wo_all = wo_ref[0]                                 # (HEADS, DH, D) bf16
    proj = jnp.zeros((t, D), jnp.float32)
    for hd in range(HEADS):                            # static head loop
        lo = hd * DH
        qh = (qkv[:, lo:lo + DH] * scale).astype(bf).reshape(seqs, LP, DH)
        kh = qkv[:, D + lo:D + lo + DH].astype(bf).reshape(seqs, LP, DH)
        vh = qkv[:, 2 * D + lo:2 * D + lo + DH].astype(bf).reshape(seqs, LP, DH)
        s = jnp.einsum("sqd,skd->sqk", qh, kh,
                       preferred_element_type=jnp.float32) + kmask    # (S,LP,LP)
        s = s - jnp.max(s, axis=-1, keepdims=True)
        p = jnp.exp(s)
        p = p * pl.reciprocal(jnp.sum(p, axis=-1, keepdims=True), approx=False)
        oh = jnp.einsum("sqk,skd->sqd", p.astype(bf), vh,
                        preferred_element_type=jnp.float32)           # (S,LP,DH)
        # per-head output projection accumulated — no head concat relayout
        proj = proj + jnp.dot(oh.reshape(t, DH).astype(bf), wo_all[hd],
                              preferred_element_type=jnp.float32)
    x = x + ls1 * (proj + bo)                          # LayerScale1 + residual

    # --- MLP block ---
    h2 = _layernorm(x, ln2w, ln2b).astype(bf)
    m = jnp.dot(h2, w1_ref[0], preferred_element_type=jnp.float32) + b1_ref[0]
    m = _gelu(m)
    m = jnp.dot(m.astype(bf), w2_ref[0],
                preferred_element_type=jnp.float32) + b2v
    x = x + ls2 * m                                    # LayerScale2 + residual

    x_ref[...] = x

    # ---- last layer: final layernorm + single store --------------------------
    @pl.when(layer == pl.num_programs(1) - 1)
    def _():
        lnf = lnf_ref[...]
        o_ref[0] = _layernorm(x, lnf[0:1], lnf[1:2]).astype(o_ref.dtype)


# ------------------------------ pallas wrapper --------------------------------
def _pack_params(params):
    bf = jnp.bfloat16
    layers = params["layers"]
    wqkv = jnp.stack([jnp.concatenate([lp["wq"], lp["wk"], lp["wv"]], axis=1)
                      for lp in layers]).astype(bf)                # (LAYERS, D, 3D)
    bqkv = jnp.stack([jnp.concatenate([lp["bq"], lp["bk"], lp["bv"]])[None, :]
                      for lp in layers])                           # (LAYERS, 1, 3D)
    wo = jnp.stack([lp["wo"].reshape(HEADS, DH, D)
                    for lp in layers]).astype(bf)                  # (LAYERS, H, DH, D)
    w1 = jnp.stack([lp["w1"] for lp in layers]).astype(bf)         # (LAYERS, D, MLP)
    b1 = jnp.stack([lp["b1"][None, :] for lp in layers])           # (LAYERS, 1, MLP)
    w2 = jnp.stack([lp["w2"] for lp in layers]).astype(bf)         # (LAYERS, MLP, D)
    vecd = jnp.stack([jnp.stack([lp["ln1_w"], lp["ln1_b"], lp["bo"], lp["ls1"],
                                 lp["ln2_w"], lp["ln2_b"], lp["b2"], lp["ls2"]])
                      for lp in layers])                           # (LAYERS, 8, D)
    pw = params["patch_w"].reshape(D, K_PATCH).T                   # (K_PATCH, D)
    pw = jnp.pad(pw, ((0, K_PAD - K_PATCH), (0, 0))).astype(bf)    # (K_PAD, D)
    # per-row additive embedding: row0 = cls + pos[0]; rows 1.. = patch_b + pos
    embed_add = params["pos"][0] + jnp.concatenate(
        [params["cls"].reshape(1, D),
         jnp.broadcast_to(params["patch_b"][None, :], (NUM_PATCH, D))], axis=0)
    embed_add = jnp.pad(embed_add, ((0, LP - L), (0, 0)))          # (LP, D)
    lnf = jnp.stack([params["ln_f_w"], params["ln_f_b"]])          # (2, D)
    return dict(wqkv=wqkv, bqkv=bqkv, wo=wo, w1=w1, b1=b1, w2=w2, vecd=vecd,
                pw=pw, embed_add=embed_add, lnf=lnf)


def _preprocess_and_patchify(images):
    """images: (B, N, C, H, W) in [0, 1] -> normalized patches (BN, P, C*ph*pw)."""
    b, n = images.shape[0], images.shape[1]
    bn = b * n
    x = images.reshape(bn, C_IN, IMG, IMG)
    # image processor normalization (do_rescale=False -> already in [0,1])
    x = (x - IMAGENET_MEAN[None, :, None, None]) / IMAGENET_STD[None, :, None, None]
    # NCHW -> (BN, gh, gw, C, ph, pw) -> (BN, P, C*ph*pw); row-major patch order
    p = x.reshape(bn, C_IN, GRID_HW, PATCH, GRID_HW, PATCH)
    p = p.transpose(0, 2, 4, 1, 3, 5).reshape(bn, NUM_PATCH, K_PATCH)
    return p


def dino_v2_forward(images, params):
    """Pallas implementation of Dino_v2.forward for tensor input (B,N,C,H,W)."""
    b, n = images.shape[0], images.shape[1]
    bn = b * n
    patches = _preprocess_and_patchify(images)                 # (BN, P, K_PATCH)
    # zero "patch" row in front (CLS), pad rows to LP and contraction to K_PAD
    patches = jnp.pad(patches, ((0, 0), (1, LP - L), (0, K_PAD - K_PATCH)))

    blocks = 2 if (bn % 2 == 0 and bn >= 2) else 1             # 2 = #TCs on v7x
    s = bn // blocks                                           # sequences per block
    t = s * LP
    patches_blk = patches.reshape(blocks, s, LP, K_PAD)

    p = _pack_params(params)
    kernel = functools.partial(_dino_layer_kernel, seqs=s)

    out = pl.pallas_call(
        kernel,
        out_shape=jax.ShapeDtypeStruct((blocks, t, D), jnp.float32),
        grid=(blocks, LAYERS),
        in_specs=[
            pl.BlockSpec((1, s, LP, K_PAD), lambda i, l: (i, 0, 0, 0)),
            pl.BlockSpec((K_PAD, D),        lambda i, l: (0, 0)),
            pl.BlockSpec((LP, D),           lambda i, l: (0, 0)),
            pl.BlockSpec((2, D),            lambda i, l: (0, 0)),
            pl.BlockSpec((1, D, 3 * D),     lambda i, l: (l, 0, 0)),
            pl.BlockSpec((1, 1, 3 * D),     lambda i, l: (l, 0, 0)),
            pl.BlockSpec((1, HEADS, DH, D), lambda i, l: (l, 0, 0, 0)),
            pl.BlockSpec((1, D, MLP),       lambda i, l: (l, 0, 0)),
            pl.BlockSpec((1, 1, MLP),       lambda i, l: (l, 0, 0)),
            pl.BlockSpec((1, MLP, D),       lambda i, l: (l, 0, 0)),
            pl.BlockSpec((1, 8, D),         lambda i, l: (l, 0, 0)),
        ],
        out_specs=pl.BlockSpec((1, t, D), lambda i, l: (i, 0, 0)),
        scratch_shapes=[pltpu.VMEM((t, D), jnp.float32)],
        compiler_params=pltpu.CompilerParams(
            dimension_semantics=("parallel", "arbitrary"),
            vmem_limit_bytes=48 * 1024 * 1024),
    )(patches_blk, p["pw"], p["embed_add"], p["lnf"], p["wqkv"], p["bqkv"],
      p["wo"], p["w1"], p["b1"], p["w2"], p["vecd"])

    # (blocks, S*LP, D) -> (BN, LP, D) -> drop padded rows
    # -> rearrange '(b n) l c -> b (n l) c'
    out = out.reshape(bn, LP, D)[:, :L, :]
    return out.reshape(b, n * L, D)


# ------------------------------ params / init ---------------------------------
def init_params(key):
    keys = iter(jax.random.split(key, 4 + LAYERS * 16))

    def nrm(shape, scale=0.02):
        return scale * jax.random.normal(next(keys), shape, jnp.float32)

    params = {
        "patch_w": nrm((D, C_IN, PATCH, PATCH)),   # PyTorch Conv2d weight layout
        "patch_b": nrm((D,)),
        "cls": nrm((1, 1, D)),
        "pos": nrm((1, L, D)),
        "ln_f_w": jnp.ones((D,), jnp.float32),
        "ln_f_b": jnp.zeros((D,), jnp.float32),
        "layers": [],
    }
    for _ in range(LAYERS):
        params["layers"].append(dict(
            ln1_w=jnp.ones((D,), jnp.float32), ln1_b=jnp.zeros((D,), jnp.float32),
            wq=nrm((D, D)), bq=nrm((D,)),
            wk=nrm((D, D)), bk=nrm((D,)),
            wv=nrm((D, D)), bv=nrm((D,)),
            wo=nrm((D, D)), bo=nrm((D,)),
            ls1=jnp.full((D,), 0.1, jnp.float32),
            ln2_w=jnp.ones((D,), jnp.float32), ln2_b=jnp.zeros((D,), jnp.float32),
            w1=nrm((D, MLP)), b1=nrm((MLP,)),
            w2=nrm((MLP, D)), b2=nrm((D,)),
            ls2=jnp.full((D,), 0.1, jnp.float32),
        ))
    return params


# ----------------------------- pure-JAX reference -----------------------------
def reference_forward(images, params):
    """Mirrors the kernel math (incl. bf16 matmul operands, f32 accumulation)."""
    bf = jnp.bfloat16
    b, n = images.shape[0], images.shape[1]
    bn = b * n
    patches = _preprocess_and_patchify(images)
    w_flat = params["patch_w"].reshape(D, K_PATCH).T
    tok = jnp.einsum("bpk,kd->bpd", patches.astype(bf), w_flat.astype(bf),
                     preferred_element_type=jnp.float32)
    embed_add = params["pos"][0] + jnp.concatenate(
        [params["cls"].reshape(1, D),
         jnp.broadcast_to(params["patch_b"][None, :], (NUM_PATCH, D))], axis=0)
    x = jnp.concatenate([jnp.zeros((bn, 1, D), jnp.float32), tok],
                        axis=1) + embed_add[None]

    def ln(v, w, bb):
        mu = jnp.mean(v, axis=-1, keepdims=True)
        var = jnp.mean((v - mu) ** 2, axis=-1, keepdims=True)
        return (v - mu) * jax.lax.rsqrt(var + EPS) * w + bb

    scale = 1.0 / (DH ** 0.5)
    for lp_ in params["layers"]:
        h = ln(x, lp_["ln1_w"], lp_["ln1_b"]).astype(bf)
        q = jnp.einsum("bld,de->ble", h, lp_["wq"].astype(bf),
                       preferred_element_type=jnp.float32) + lp_["bq"]
        k = jnp.einsum("bld,de->ble", h, lp_["wk"].astype(bf),
                       preferred_element_type=jnp.float32) + lp_["bk"]
        v = jnp.einsum("bld,de->ble", h, lp_["wv"].astype(bf),
                       preferred_element_type=jnp.float32) + lp_["bv"]
        qh = (q * scale).astype(bf).reshape(bn, L, HEADS, DH)
        kh = k.astype(bf).reshape(bn, L, HEADS, DH)
        vh = v.astype(bf).reshape(bn, L, HEADS, DH)
        s = jnp.einsum("blhd,bmhd->bhlm", qh, kh,
                       preferred_element_type=jnp.float32)
        s = s - jnp.max(s, axis=-1, keepdims=True)
        p = jnp.exp(s)
        p = p * (1.0 / jnp.sum(p, axis=-1, keepdims=True))
        o = jnp.einsum("bhlm,bmhd->blhd", p.astype(bf), vh,
                       preferred_element_type=jnp.float32).reshape(bn, L, D)
        o = jnp.einsum("bld,de->ble", o.astype(bf), lp_["wo"].astype(bf),
                       preferred_element_type=jnp.float32) + lp_["bo"]
        x = x + lp_["ls1"] * o
        h2 = ln(x, lp_["ln2_w"], lp_["ln2_b"]).astype(bf)
        m = jnp.einsum("bld,de->ble", h2, lp_["w1"].astype(bf),
                       preferred_element_type=jnp.float32) + lp_["b1"]
        m = jax.nn.gelu(m, approximate=True)
        m = jnp.einsum("bld,de->ble", m.astype(bf), lp_["w2"].astype(bf),
                       preferred_element_type=jnp.float32) + lp_["b2"]
        x = x + lp_["ls2"] * m
    x = ln(x, params["ln_f_w"], params["ln_f_b"])
    return x.reshape(b, n * L, D)


# ------------------------------------ main ------------------------------------
if __name__ == "__main__":
    key = jax.random.PRNGKey(0)
    pkey, xkey = jax.random.split(key)
    params = init_params(pkey)
    images = jax.random.uniform(xkey, (B, N_VIEW, C_IN, IMG, IMG), jnp.float32)

    fwd = jax.jit(functools.partial(dino_v2_forward, params=params))
    out = jax.block_until_ready(fwd(images))

    assert out.shape == (B, N_VIEW * L, D), out.shape
    ref = reference_forward(images, params)
    # tolerance accounts for bf16 matmul operands (kernel and reference match math)
    np.testing.assert_allclose(np.asarray(out), np.asarray(ref),
                               atol=3e-3, rtol=3e-3)
    print("KERNEL_OK")
</pallas_src>

<mosaic_0001>
module attributes {stable_mosaic.version = 11 : i64} {
  func.func @_dino_layer_kernel(%arg0: i32, %arg1: i32, %arg2: memref<1x2x8x256xf32, #tpu.memory_space<vmem>>, %arg3: memref<256x32xbf16, #tpu.memory_space<vmem>>, %arg4: memref<8x32xf32, #tpu.memory_space<vmem>>, %arg5: memref<2x32xf32, #tpu.memory_space<vmem>>, %arg6: memref<1x32x96xbf16, #tpu.memory_space<vmem>>, %arg7: memref<1x1x96xf32, #tpu.memory_space<vmem>>, %arg8: memref<1x4x8x32xbf16, #tpu.memory_space<vmem>>, %arg9: memref<1x32x128xbf16, #tpu.memory_space<vmem>>, %arg10: memref<1x1x128xf32, #tpu.memory_space<vmem>>, %arg11: memref<1x128x32xbf16, #tpu.memory_space<vmem>>, %arg12: memref<1x8x32xf32, #tpu.memory_space<vmem>>, %arg13: memref<1x16x32xf32, #tpu.memory_space<vmem>>, %arg14: memref<16x32xf32, #tpu.memory_space<vmem>>) attributes {dimension_semantics = [#tpu.dimension_semantics<parallel>, #tpu.dimension_semantics<arbitrary>], iteration_bounds = array<i64: 2, 2>, scalar_prefetch = 0 : i64, scratch_operands = 1 : i64, tpu.core_type = #tpu.core_type<tc>, window_params = [{transform_indices = @transform_0, window_bounds = array<i64: 1, 2, 8, 256>}, {pipeline_mode = #tpu.pipeline_mode<synchronous>, transform_indices = @transform_1, window_bounds = array<i64: 256, 32>}, {pipeline_mode = #tpu.pipeline_mode<synchronous>, transform_indices = @transform_2, window_bounds = array<i64: 8, 32>}, {pipeline_mode = #tpu.pipeline_mode<synchronous>, transform_indices = @transform_3, window_bounds = array<i64: 2, 32>}, {transform_indices = @transform_4, window_bounds = array<i64: 1, 32, 96>}, {transform_indices = @transform_5, window_bounds = array<i64: 1, 1, 96>}, {transform_indices = @transform_6, window_bounds = array<i64: 1, 4, 8, 32>}, {transform_indices = @transform_7, window_bounds = array<i64: 1, 32, 128>}, {transform_indices = @transform_8, window_bounds = array<i64: 1, 1, 128>}, {transform_indices = @transform_9, window_bounds = array<i64: 1, 128, 32>}, {transform_indices = @transform_10, window_bounds = array<i64: 1, 8, 32>}, {transform_indices = @transform_11, window_bounds = array<i64: 1, 16, 32>}]} {
    %c0_i32 = arith.constant 0 : i32
    %0 = arith.cmpi eq, %arg1, %c0_i32 : i32
    %1 = arith.extui %0 : i1 to i32
    %c0_i32_0 = arith.constant 0 : i32
    %2 = arith.cmpi ne, %1, %c0_i32_0 : i32
    scf.if %2 {
      %c0_70 = arith.constant 0 : index
      %c0_71 = arith.constant 0 : index
      %c0_72 = arith.constant 0 : index
      %c0_73 = arith.constant 0 : index
      %242 = vector.load %arg2[%c0_70, %c0_71, %c0_72, %c0_73] : memref<1x2x8x256xf32, #tpu.memory_space<vmem>>, vector<1x2x8x256xf32>
      %243 = vector.shape_cast %242 : vector<1x2x8x256xf32> to vector<2x8x256xf32>
      %244 = vector.shape_cast %243 : vector<2x8x256xf32> to vector<16x256xf32>
      %245 = arith.truncf %244 : vector<16x256xf32> to vector<16x256xbf16>
      %c0_74 = arith.constant 0 : index
      %c0_75 = arith.constant 0 : index
      %246 = vector.load %arg3[%c0_74, %c0_75] : memref<256x32xbf16, #tpu.memory_space<vmem>>, vector<256x32xbf16>
      %cst_76 = arith.constant dense<0.000000e+00> : vector<16x32xf32>
      %247 = tpu.matmul %245, %246, %cst_76 {dimension_numbers = #tpu.dot_dimension_numbers<[1], [0], [0], [1], [0, 0, 1, 1], [], []>} : vector<16x256xbf16>, vector<256x32xbf16>, vector<16x32xf32> -> vector<16x32xf32>
      %248 = vector.shape_cast %247 : vector<16x32xf32> to vector<2x8x32xf32>
      %c0_77 = arith.constant 0 : index
      %c0_78 = arith.constant 0 : index
      %249 = vector.load %arg4[%c0_77, %c0_78] : memref<8x32xf32, #tpu.memory_space<vmem>>, vector<8x32xf32>
      %250 = vector.shape_cast %249 : vector<8x32xf32> to vector<1x8x32xf32>
      %251 = vector.broadcast %250 : vector<1x8x32xf32> to vector<2x8x32xf32>
      %252 = arith.addf %248, %251 : vector<2x8x32xf32>
      %253 = vector.shape_cast %252 : vector<2x8x32xf32> to vector<16x32xf32>
      %c0_79 = arith.constant 0 : index
      %c0_80 = arith.constant 0 : index
      %254 = vector.load %arg14[%c0_79, %c0_80] : memref<16x32xf32, #tpu.memory_space<vmem>>, vector<16x32xf32>
      tpu.vector_store %arg14[%c0_79, %c0_80], %253 {strides = array<i32>} : memref<16x32xf32, #tpu.memory_space<vmem>>, vector<16x32xf32>,
    } else {
    }
    %c0 = arith.constant 0 : index
    %c0_1 = arith.constant 0 : index
    %c0_2 = arith.constant 0 : index
    %3 = vector.load %arg12[%c0, %c0_1, %c0_2] : memref<1x8x32xf32, #tpu.memory_space<vmem>>, vector<1x8x32xf32>
    %4 = vector.shape_cast %3 : vector<1x8x32xf32> to vector<8x32xf32>
    %5 = vector.extract_strided_slice %4 {offsets = [0, 0], sizes = [1, 32], strides = [1, 1]} : vector<8x32xf32> to vector<1x32xf32>
    %6 = vector.extract_strided_slice %4 {offsets = [1, 0], sizes = [1, 32], strides = [1, 1]} : vector<8x32xf32> to vector<1x32xf32>
    %7 = vector.extract_strided_slice %4 {offsets = [2, 0], sizes = [1, 32], strides = [1, 1]} : vector<8x32xf32> to vector<1x32xf32>
    %8 = vector.extract_strided_slice %4 {offsets = [3, 0], sizes = [1, 32], strides = [1, 1]} : vector<8x32xf32> to vector<1x32xf32>
    %9 = vector.extract_strided_slice %4 {offsets = [4, 0], sizes = [1, 32], strides = [1, 1]} : vector<8x32xf32> to vector<1x32xf32>
    %10 = vector.extract_strided_slice %4 {offsets = [5, 0], sizes = [1, 32], strides = [1, 1]} : vector<8x32xf32> to vector<1x32xf32>
    %11 = vector.extract_strided_slice %4 {offsets = [6, 0], sizes = [1, 32], strides = [1, 1]} : vector<8x32xf32> to vector<1x32xf32>
    %12 = vector.extract_strided_slice %4 {offsets = [7, 0], sizes = [1, 32], strides = [1, 1]} : vector<8x32xf32> to vector<1x32xf32>
    %c0_3 = arith.constant 0 : index
    %c0_4 = arith.constant 0 : index
    %13 = vector.load %arg14[%c0_3, %c0_4] : memref<16x32xf32, #tpu.memory_space<vmem>>, vector<16x32xf32>
    %cst = arith.constant dense<0.000000e+00> : vector<16xf32>
    %14 = vector.multi_reduction <add>, %13, %cst [1] : vector<16x32xf32> to vector<16xf32>
    %15 = vector.shape_cast %14 : vector<16xf32> to vector<16x1xf32>
    %cst_5 = arith.constant 3.200000e+01 : f32
    %16 = vector.broadcast %cst_5 : f32 to vector<16x1xf32>
    %17 = arith.divf %15, %16 : vector<16x1xf32>
    %18 = vector.broadcast %17 : vector<16x1xf32> to vector<16x32xf32>
    %19 = arith.subf %13, %18 : vector<16x32xf32>
    %20 = arith.mulf %19, %19 : vector<16x32xf32>
    %cst_6 = arith.constant dense<0.000000e+00> : vector<16xf32>
    %21 = vector.multi_reduction <add>, %20, %cst_6 [1] : vector<16x32xf32> to vector<16xf32>
    %22 = vector.shape_cast %21 : vector<16xf32> to vector<16x1xf32>
    %cst_7 = arith.constant 3.200000e+01 : f32
    %23 = vector.broadcast %cst_7 : f32 to vector<16x1xf32>
    %24 = arith.divf %22, %23 : vector<16x1xf32>
    %25 = vector.broadcast %17 : vector<16x1xf32> to vector<16x32xf32>
    %26 = arith.subf %13, %25 : vector<16x32xf32>
    %cst_8 = arith.constant 9.99999997E-7 : f32
    %27 = vector.broadcast %cst_8 : f32 to vector<16x1xf32>
    %28 = arith.addf %24, %27 : vector<16x1xf32>
    %29 = math.rsqrt %28 : vector<16x1xf32>
    %30 = vector.broadcast %29 : vector<16x1xf32> to vector<16x32xf32>
    %31 = arith.mulf %26, %30 : vector<16x32xf32>
    %32 = vector.broadcast %5 : vector<1x32xf32> to vector<16x32xf32>
    %33 = arith.mulf %31, %32 : vector<16x32xf32>
    %34 = vector.broadcast %6 : vector<1x32xf32> to vector<16x32xf32>
    %35 = arith.addf %33, %34 : vector<16x32xf32>
    %36 = arith.truncf %35 : vector<16x32xf32> to vector<16x32xbf16>
    %c0_9 = arith.constant 0 : index
    %c0_10 = arith.constant 0 : index
    %c0_11 = arith.constant 0 : index
    %37 = vector.load %arg6[%c0_9, %c0_10, %c0_11] : memref<1x32x96xbf16, #tpu.memory_space<vmem>>, vector<1x32x96xbf16>
    %38 = vector.shape_cast %37 : vector<1x32x96xbf16> to vector<32x96xbf16>
    %cst_12 = arith.constant dense<0.000000e+00> : vector<16x96xf32>
    %39 = tpu.matmul %36, %38, %cst_12 {dimension_numbers = #tpu.dot_dimension_numbers<[1], [0], [0], [1], [0, 0, 1, 1], [], []>} : vector<16x32xbf16>, vector<32x96xbf16>, vector<16x96xf32> -> vector<16x96xf32>
    %c0_13 = arith.constant 0 : index
    %c0_14 = arith.constant 0 : index
    %c0_15 = arith.constant 0 : index
    %40 = vector.load %arg7[%c0_13, %c0_14, %c0_15] : memref<1x1x96xf32, #tpu.memory_space<vmem>>, vector<1x1x96xf32>
    %41 = vector.shape_cast %40 : vector<1x1x96xf32> to vector<1x96xf32>
    %42 = vector.broadcast %41 : vector<1x96xf32> to vector<16x96xf32>
    %43 = arith.addf %39, %42 : vector<16x96xf32>
    %44 = tpu.iota {dimensions = array<i32: 2>} : vector<1x1x8xi32>
    %c5_i32 = arith.constant 5 : i32
    %45 = vector.broadcast %c5_i32 : i32 to vector<1x1x8xi32>
    %46 = arith.cmpi slt, %44, %45 : vector<1x1x8xi32>
    %cst_16 = arith.constant 0.000000e+00 : f32
    %cst_17 = arith.constant -1.000000e+30 : f32
    %47 = vector.broadcast %cst_16 : f32 to vector<1x1x8xf32>
    %48 = vector.broadcast %cst_17 : f32 to vector<1x1x8xf32>
    %49 = arith.select %46, %47, %48 : vector<1x1x8xi1>, vector<1x1x8xf32>
    %c0_18 = arith.constant 0 : index
    %c0_19 = arith.constant 0 : index
    %c0_20 = arith.constant 0 : index
    %c0_21 = arith.constant 0 : index
    %50 = vector.load %arg8[%c0_18, %c0_19, %c0_20, %c0_21] : memref<1x4x8x32xbf16, #tpu.memory_space<vmem>>, vector<1x4x8x32xbf16>
    %51 = vector.shape_cast %50 : vector<1x4x8x32xbf16> to vector<4x8x32xbf16>
    %cst_22 = arith.constant 0.000000e+00 : f32
    %52 = vector.broadcast %cst_22 : f32 to vector<16x32xf32>
    %53 = vector.extract_strided_slice %43 {offsets = [0, 0], sizes = [16, 8], strides = [1, 1]} : vector<16x96xf32> to vector<16x8xf32>
    %cst_23 = arith.constant 0.353553385 : f32
    %54 = vector.broadcast %cst_23 : f32 to vector<16x8xf32>
    %55 = arith.mulf %53, %54 : vector<16x8xf32>
    %56 = arith.truncf %55 : vector<16x8xf32> to vector<16x8xbf16>
    %57 = vector.shape_cast %56 : vector<16x8xbf16> to vector<2x8x8xbf16>
    %58 = vector.extract_strided_slice %43 {offsets = [0, 32], sizes = [16, 8], strides = [1, 1]} : vector<16x96xf32> to vector<16x8xf32>
    %59 = arith.truncf %58 : vector<16x8xf32> to vector<16x8xbf16>
    %60 = vector.shape_cast %59 : vector<16x8xbf16> to vector<2x8x8xbf16>
    %61 = vector.extract_strided_slice %43 {offsets = [0, 64], sizes = [16, 8], strides = [1, 1]} : vector<16x96xf32> to vector<16x8xf32>
    %62 = arith.truncf %61 : vector<16x8xf32> to vector<16x8xbf16>
    %63 = vector.shape_cast %62 : vector<16x8xbf16> to vector<2x8x8xbf16>
    "tpu.trace_start"() <{level = 10 : i32, message = "sqd,skd->sqk"}> : () -> ()
    %cst_24 = arith.constant dense<0.000000e+00> : vector<2x8x8xf32>
    %64 = tpu.matmul %57, %60, %cst_24 {dimension_numbers = #tpu.dot_dimension_numbers<[2], [2], [1], [1], [0, 0, 0, 1, 1, 1], [0], [0]>} : vector<2x8x8xbf16>, vector<2x8x8xbf16>, vector<2x8x8xf32> -> vector<2x8x8xf32>
    "tpu.trace_stop"() : () -> ()
    %65 = vector.broadcast %49 : vector<1x1x8xf32> to vector<2x8x8xf32>
    %66 = arith.addf %64, %65 : vector<2x8x8xf32>
    %cst_25 = arith.constant dense<0xFF800000> : vector<2x8xf32>
    %67 = vector.multi_reduction <maximumf>, %66, %cst_25 [2] : vector<2x8x8xf32> to vector<2x8xf32>
    %68 = vector.shape_cast %67 : vector<2x8xf32> to vector<2x8x1xf32>
    %69 = vector.broadcast %68 : vector<2x8x1xf32> to vector<2x8x8xf32>
    %70 = arith.subf %66, %69 : vector<2x8x8xf32>
    %71 = math.exp %70 : vector<2x8x8xf32>
    %cst_26 = arith.constant dense<0.000000e+00> : vector<2x8xf32>
    %72 = vector.multi_reduction <add>, %71, %cst_26 [2] : vector<2x8x8xf32> to vector<2x8xf32>
    %73 = vector.shape_cast %72 : vector<2x8xf32> to vector<2x8x1xf32>
    %74 = tpu.reciprocal %73 : vector<2x8x1xf32> -> vector<2x8x1xf32>
    %75 = vector.broadcast %74 : vector<2x8x1xf32> to vector<2x8x8xf32>
    %76 = arith.mulf %71, %75 : vector<2x8x8xf32>
    %77 = arith.truncf %76 : vector<2x8x8xf32> to vector<2x8x8xbf16>
    "tpu.trace_start"() <{level = 10 : i32, message = "sqk,skd->sqd"}> : () -> ()
    %cst_27 = arith.constant dense<0.000000e+00> : vector<2x8x8xf32>
    %78 = tpu.matmul %77, %63, %cst_27 {dimension_numbers = #tpu.dot_dimension_numbers<[2], [1], [1], [2], [0, 0, 0, 1, 1, 2], [0], [0]>} : vector<2x8x8xbf16>, vector<2x8x8xbf16>, vector<2x8x8xf32> -> vector<2x8x8xf32>
    "tpu.trace_stop"() : () -> ()
    %79 = vector.shape_cast %78 : vector<2x8x8xf32> to vector<16x8xf32>
    %80 = arith.truncf %79 : vector<16x8xf32> to vector<16x8xbf16>
    %81 = vector.extract_strided_slice %51 {offsets = [0, 0, 0], sizes = [1, 8, 32], strides = [1, 1, 1]} : vector<4x8x32xbf16> to vector<1x8x32xbf16>
    %82 = vector.shape_cast %81 : vector<1x8x32xbf16> to vector<8x32xbf16>
    %cst_28 = arith.constant dense<0.000000e+00> : vector<16x32xf32>
    %83 = tpu.matmul %80, %82, %cst_28 {dimension_numbers = #tpu.dot_dimension_numbers<[1], [0], [0], [1], [0, 0, 1, 1], [], []>} : vector<16x8xbf16>, vector<8x32xbf16>, vector<16x32xf32> -> vector<16x32xf32>
    %84 = arith.addf %52, %83 : vector<16x32xf32>
    %85 = vector.extract_strided_slice %43 {offsets = [0, 8], sizes = [16, 8], strides = [1, 1]} : vector<16x96xf32> to vector<16x8xf32>
    %cst_29 = arith.constant 0.353553385 : f32
    %86 = vector.broadcast %cst_29 : f32 to vector<16x8xf32>
    %87 = arith.mulf %85, %86 : vector<16x8xf32>
    %88 = arith.truncf %87 : vector<16x8xf32> to vector<16x8xbf16>
    %89 = vector.shape_cast %88 : vector<16x8xbf16> to vector<2x8x8xbf16>
    %90 = vector.extract_strided_slice %43 {offsets = [0, 40], sizes = [16, 8], strides = [1, 1]} : vector<16x96xf32> to vector<16x8xf32>
    %91 = arith.truncf %90 : vector<16x8xf32> to vector<16x8xbf16>
    %92 = vector.shape_cast %91 : vector<16x8xbf16> to vector<2x8x8xbf16>
    %93 = vector.extract_strided_slice %43 {offsets = [0, 72], sizes = [16, 8], strides = [1, 1]} : vector<16x96xf32> to vector<16x8xf32>
    %94 = arith.truncf %93 : vector<16x8xf32> to vector<16x8xbf16>
    %95 = vector.shape_cast %94 : vector<16x8xbf16> to vector<2x8x8xbf16>
    "tpu.trace_start"() <{level = 10 : i32, message = "sqd,skd->sqk"}> : () -> ()
    %cst_30 = arith.constant dense<0.000000e+00> : vector<2x8x8xf32>
    %96 = tpu.matmul %89, %92, %cst_30 {dimension_numbers = #tpu.dot_dimension_numbers<[2], [2], [1], [1], [0, 0, 0, 1, 1, 1], [0], [0]>} : vector<2x8x8xbf16>, vector<2x8x8xbf16>, vector<2x8x8xf32> -> vector<2x8x8xf32>
    "tpu.trace_stop"() : () -> ()
    %97 = vector.broadcast %49 : vector<1x1x8xf32> to vector<2x8x8xf32>
    %98 = arith.addf %96, %97 : vector<2x8x8xf32>
    %cst_31 = arith.constant dense<0xFF800000> : vector<2x8xf32>
    %99 = vector.multi_reduction <maximumf>, %98, %cst_31 [2] : vector<2x8x8xf32> to vector<2x8xf32>
    %100 = vector.shape_cast %99 : vector<2x8xf32> to vector<2x8x1xf32>
    %101 = vector.broadcast %100 : vector<2x8x1xf32> to vector<2x8x8xf32>
    %102 = arith.subf %98, %101 : vector<2x8x8xf32>
    %103 = math.exp %102 : vector<2x8x8xf32>
    %cst_32 = arith.constant dense<0.000000e+00> : vector<2x8xf32>
    %104 = vector.multi_reduction <add>, %103, %cst_32 [2] : vector<2x8x8xf32> to vector<2x8xf32>
    %105 = vector.shape_cast %104 : vector<2x8xf32> to vector<2x8x1xf32>
    %106 = tpu.reciprocal %105 : vector<2x8x1xf32> -> vector<2x8x1xf32>
    %107 = vector.broadcast %106 : vector<2x8x1xf32> to vector<2x8x8xf32>
    %108 = arith.mulf %103, %107 : vector<2x8x8xf32>
    %109 = arith.truncf %108 : vector<2x8x8xf32> to vector<2x8x8xbf16>
    "tpu.trace_start"() <{level = 10 : i32, message = "sqk,skd->sqd"}> : () -> ()
    %cst_33 = arith.constant dense<0.000000e+00> : vector<2x8x8xf32>
    %110 = tpu.matmul %109, %95, %cst_33 {dimension_numbers = #tpu.dot_dimension_numbers<[2], [1], [1], [2], [0, 0, 0, 1, 1, 2], [0], [0]>} : vector<2x8x8xbf16>, vector<2x8x8xbf16>, vector<2x8x8xf32> -> vector<2x8x8xf32>
    "tpu.trace_stop"() : () -> ()
    %111 = vector.shape_cast %110 : vector<2x8x8xf32> to vector<16x8xf32>
    %112 = arith.truncf %111 : vector<16x8xf32> to vector<16x8xbf16>
    %113 = vector.extract_strided_slice %51 {offsets = [1, 0, 0], sizes = [1, 8, 32], strides = [1, 1, 1]} : vector<4x8x32xbf16> to vector<1x8x32xbf16>
    %114 = vector.shape_cast %113 : vector<1x8x32xbf16> to vector<8x32xbf16>
    %cst_34 = arith.constant dense<0.000000e+00> : vector<16x32xf32>
    %115 = tpu.matmul %112, %114, %cst_34 {dimension_numbers = #tpu.dot_dimension_numbers<[1], [0], [0], [1], [0, 0, 1, 1], [], []>} : vector<16x8xbf16>, vector<8x32xbf16>, vector<16x32xf32> -> vector<16x32xf32>
    %116 = arith.addf %84, %115 : vector<16x32xf32>
    %117 = vector.extract_strided_slice %43 {offsets = [0, 16], sizes = [16, 8], strides = [1, 1]} : vector<16x96xf32> to vector<16x8xf32>
    %cst_35 = arith.constant 0.353553385 : f32
    %118 = vector.broadcast %cst_35 : f32 to vector<16x8xf32>
    %119 = arith.mulf %117, %118 : vector<16x8xf32>
    %120 = arith.truncf %119 : vector<16x8xf32> to vector<16x8xbf16>
    %121 = vector.shape_cast %120 : vector<16x8xbf16> to vector<2x8x8xbf16>
    %122 = vector.extract_strided_slice %43 {offsets = [0, 48], sizes = [16, 8], strides = [1, 1]} : vector<16x96xf32> to vector<16x8xf32>
    %123 = arith.truncf %122 : vector<16x8xf32> to vector<16x8xbf16>
    %124 = vector.shape_cast %123 : vector<16x8xbf16> to vector<2x8x8xbf16>
    %125 = vector.extract_strided_slice %43 {offsets = [0, 80], sizes = [16, 8], strides = [1, 1]} : vector<16x96xf32> to vector<16x8xf32>
    %126 = arith.truncf %125 : vector<16x8xf32> to vector<16x8xbf16>
    %127 = vector.shape_cast %126 : vector<16x8xbf16> to vector<2x8x8xbf16>
    "tpu.trace_start"() <{level = 10 : i32, message = "sqd,skd->sqk"}> : () -> ()
    %cst_36 = arith.constant dense<0.000000e+00> : vector<2x8x8xf32>
    %128 = tpu.matmul %121, %124, %cst_36 {dimension_numbers = #tpu.dot_dimension_numbers<[2], [2], [1], [1], [0, 0, 0, 1, 1, 1], [0], [0]>} : vector<2x8x8xbf16>, vector<2x8x8xbf16>, vector<2x8x8xf32> -> vector<2x8x8xf32>
    "tpu.trace_stop"() : () -> ()
    %129 = vector.broadcast %49 : vector<1x1x8xf32> to vector<2x8x8xf32>
    %130 = arith.addf %128, %129 : vector<2x8x8xf32>
    %cst_37 = arith.constant dense<0xFF800000> : vector<2x8xf32>
    %131 = vector.multi_reduction <maximumf>, %130, %cst_37 [2] : vector<2x8x8xf32> to vector<2x8xf32>
    %132 = vector.shape_cast %131 : vector<2x8xf32> to vector<2x8x1xf32>
    %133 = vector.broadcast %132 : vector<2x8x1xf32> to vector<2x8x8xf32>
    %134 = arith.subf %130, %133 : vector<2x8x8xf32>
    %135 = math.exp %134 : vector<2x8x8xf32>
    %cst_38 = arith.constant dense<0.000000e+00> : vector<2x8xf32>
    %136 = vector.multi_reduction <add>, %135, %cst_38 [2] : vector<2x8x8xf32> to vector<2x8xf32>
    %137 = vector.shape_cast %136 : vector<2x8xf32> to vector<2x8x1xf32>
    %138 = tpu.reciprocal %137 : vector<2x8x1xf32> -> vector<2x8x1xf32>
    %139 = vector.broadcast %138 : vector<2x8x1xf32> to vector<2x8x8xf32>
    %140 = arith.mulf %135, %139 : vector<2x8x8xf32>
    %141 = arith.truncf %140 : vector<2x8x8xf32> to vector<2x8x8xbf16>
    "tpu.trace_start"() <{level = 10 : i32, message = "sqk,skd->sqd"}> : () -> ()
    %cst_39 = arith.constant dense<0.000000e+00> : vector<2x8x8xf32>
    %142 = tpu.matmul %141, %127, %cst_39 {dimension_numbers = #tpu.dot_dimension_numbers<[2], [1], [1], [2], [0, 0, 0, 1, 1, 2], [0], [0]>} : vector<2x8x8xbf16>, vector<2x8x8xbf16>, vector<2x8x8xf32> -> vector<2x8x8xf32>
    "tpu.trace_stop"() : () -> ()
    %143 = vector.shape_cast %142 : vector<2x8x8xf32> to vector<16x8xf32>
    %144 = arith.truncf %143 : vector<16x8xf32> to vector<16x8xbf16>
    %145 = vector.extract_strided_slice %51 {offsets = [2, 0, 0], sizes = [1, 8, 32], strides = [1, 1, 1]} : vector<4x8x32xbf16> to vector<1x8x32xbf16>
    %146 = vector.shape_cast %145 : vector<1x8x32xbf16> to vector<8x32xbf16>
    %cst_40 = arith.constant dense<0.000000e+00> : vector<16x32xf32>
    %147 = tpu.matmul %144, %146, %cst_40 {dimension_numbers = #tpu.dot_dimension_numbers<[1], [0], [0], [1], [0, 0, 1, 1], [], []>} : vector<16x8xbf16>, vector<8x32xbf16>, vector<16x32xf32> -> vector<16x32xf32>
    %148 = arith.addf %116, %147 : vector<16x32xf32>
    %149 = vector.extract_strided_slice %43 {offsets = [0, 24], sizes = [16, 8], strides = [1, 1]} : vector<16x96xf32> to vector<16x8xf32>
    %cst_41 = arith.constant 0.353553385 : f32
    %150 = vector.broadcast %cst_41 : f32 to vector<16x8xf32>
    %151 = arith.mulf %149, %150 : vector<16x8xf32>
    %152 = arith.truncf %151 : vector<16x8xf32> to vector<16x8xbf16>
    %153 = vector.shape_cast %152 : vector<16x8xbf16> to vector<2x8x8xbf16>
    %154 = vector.extract_strided_slice %43 {offsets = [0, 56], sizes = [16, 8], strides = [1, 1]} : vector<16x96xf32> to vector<16x8xf32>
    %155 = arith.truncf %154 : vector<16x8xf32> to vector<16x8xbf16>
    %156 = vector.shape_cast %155 : vector<16x8xbf16> to vector<2x8x8xbf16>
    %157 = vector.extract_strided_slice %43 {offsets = [0, 88], sizes = [16, 8], strides = [1, 1]} : vector<16x96xf32> to vector<16x8xf32>
    %158 = arith.truncf %157 : vector<16x8xf32> to vector<16x8xbf16>
    %159 = vector.shape_cast %158 : vector<16x8xbf16> to vector<2x8x8xbf16>
    "tpu.trace_start"() <{level = 10 : i32, message = "sqd,skd->sqk"}> : () -> ()
    %cst_42 = arith.constant dense<0.000000e+00> : vector<2x8x8xf32>
    %160 = tpu.matmul %153, %156, %cst_42 {dimension_numbers = #tpu.dot_dimension_numbers<[2], [2], [1], [1], [0, 0, 0, 1, 1, 1], [0], [0]>} : vector<2x8x8xbf16>, vector<2x8x8xbf16>, vector<2x8x8xf32> -> vector<2x8x8xf32>
    "tpu.trace_stop"() : () -> ()
    %161 = vector.broadcast %49 : vector<1x1x8xf32> to vector<2x8x8xf32>
    %162 = arith.addf %160, %161 : vector<2x8x8xf32>
    %cst_43 = arith.constant dense<0xFF800000> : vector<2x8xf32>
    %163 = vector.multi_reduction <maximumf>, %162, %cst_43 [2] : vector<2x8x8xf32> to vector<2x8xf32>
    %164 = vector.shape_cast %163 : vector<2x8xf32> to vector<2x8x1xf32>
    %165 = vector.broadcast %164 : vector<2x8x1xf32> to vector<2x8x8xf32>
    %166 = arith.subf %162, %165 : vector<2x8x8xf32>
    %167 = math.exp %166 : vector<2x8x8xf32>
    %cst_44 = arith.constant dense<0.000000e+00> : vector<2x8xf32>
    %168 = vector.multi_reduction <add>, %167, %cst_44 [2] : vector<2x8x8xf32> to vector<2x8xf32>
    %169 = vector.shape_cast %168 : vector<2x8xf32> to vector<2x8x1xf32>
    %170 = tpu.reciprocal %169 : vector<2x8x1xf32> -> vector<2x8x1xf32>
    %171 = vector.broadcast %170 : vector<2x8x1xf32> to vector<2x8x8xf32>
    %172 = arith.mulf %167, %171 : vector<2x8x8xf32>
    %173 = arith.truncf %172 : vector<2x8x8xf32> to vector<2x8x8xbf16>
    "tpu.trace_start"() <{level = 10 : i32, message = "sqk,skd->sqd"}> : () -> ()
    %cst_45 = arith.constant dense<0.000000e+00> : vector<2x8x8xf32>
    %174 = tpu.matmul %173, %159, %cst_45 {dimension_numbers = #tpu.dot_dimension_numbers<[2], [1], [1], [2], [0, 0, 0, 1, 1, 2], [0], [0]>} : vector<2x8x8xbf16>, vector<2x8x8xbf16>, vector<2x8x8xf32> -> vector<2x8x8xf32>
    "tpu.trace_stop"() : () -> ()
    %175 = vector.shape_cast %174 : vector<2x8x8xf32> to vector<16x8xf32>
    %176 = arith.truncf %175 : vector<16x8xf32> to vector<16x8xbf16>
    %177 = vector.extract_strided_slice %51 {offsets = [3, 0, 0], sizes = [1, 8, 32], strides = [1, 1, 1]} : vector<4x8x32xbf16> to vector<1x8x32xbf16>
    %178 = vector.shape_cast %177 : vector<1x8x32xbf16> to vector<8x32xbf16>
    %cst_46 = arith.constant dense<0.000000e+00> : vector<16x32xf32>
    %179 = tpu.matmul %176, %178, %cst_46 {dimension_numbers = #tpu.dot_dimension_numbers<[1], [0], [0], [1], [0, 0, 1, 1], [], []>} : vector<16x8xbf16>, vector<8x32xbf16>, vector<16x32xf32> -> vector<16x32xf32>
    %180 = arith.addf %148, %179 : vector<16x32xf32>
    %181 = vector.broadcast %7 : vector<1x32xf32> to vector<16x32xf32>
    %182 = arith.addf %180, %181 : vector<16x32xf32>
    %183 = vector.broadcast %8 : vector<1x32xf32> to vector<16x32xf32>
    %184 = arith.mulf %183, %182 : vector<16x32xf32>
    %185 = arith.addf %13, %184 : vector<16x32xf32>
    %cst_47 = arith.constant dense<0.000000e+00> : vector<16xf32>
    %186 = vector.multi_reduction <add>, %185, %cst_47 [1] : vector<16x32xf32> to vector<16xf32>
    %187 = vector.shape_cast %186 : vector<16xf32> to vector<16x1xf32>
    %cst_48 = arith.constant 3.200000e+01 : f32
    %188 = vector.broadcast %cst_48 : f32 to vector<16x1xf32>
    %189 = arith.divf %187, %188 : vector<16x1xf32>
    %190 = vector.broadcast %189 : vector<16x1xf32> to vector<16x32xf32>
    %191 = arith.subf %185, %190 : vector<16x32xf32>
    %192 = arith.mulf %191, %191 : vector<16x32xf32>
    %cst_49 = arith.constant dense<0.000000e+00> : vector<16xf32>
    %193 = vector.multi_reduction <add>, %192, %cst_49 [1] : vector<16x32xf32> to vector<16xf32>
    %194 = vector.shape_cast %193 : vector<16xf32> to vector<16x1xf32>
    %cst_50 = arith.constant 3.200000e+01 : f32
    %195 = vector.broadcast %cst_50 : f32 to vector<16x1xf32>
    %196 = arith.divf %194, %195 : vector<16x1xf32>
    %197 = vector.broadcast %189 : vector<16x1xf32> to vector<16x32xf32>
    %198 = arith.subf %185, %197 : vector<16x32xf32>
    %cst_51 = arith.constant 9.99999997E-7 : f32
    %199 = vector.broadcast %cst_51 : f32 to vector<16x1xf32>
    %200 = arith.addf %196, %199 : vector<16x1xf32>
    %201 = math.rsqrt %200 : vector<16x1xf32>
    %202 = vector.broadcast %201 : vector<16x1xf32> to vector<16x32xf32>
    %203 = arith.mulf %198, %202 : vector<16x32xf32>
    %204 = vector.broadcast %9 : vector<1x32xf32> to vector<16x32xf32>
    %205 = arith.mulf %203, %204 : vector<16x32xf32>
    %206 = vector.broadcast %10 : vector<1x32xf32> to vector<16x32xf32>
    %207 = arith.addf %205, %206 : vector<16x32xf32>
    %208 = arith.truncf %207 : vector<16x32xf32> to vector<16x32xbf16>
    %c0_52 = arith.constant 0 : index
    %c0_53 = arith.constant 0 : index
    %c0_54 = arith.constant 0 : index
    %209 = vector.load %arg9[%c0_52, %c0_53, %c0_54] : memref<1x32x128xbf16, #tpu.memory_space<vmem>>, vector<1x32x128xbf16>
    %210 = vector.shape_cast %209 : vector<1x32x128xbf16> to vector<32x128xbf16>
    %cst_55 = arith.constant dense<0.000000e+00> : vector<16x128xf32>
    %211 = tpu.matmul %208, %210, %cst_55 {dimension_numbers = #tpu.dot_dimension_numbers<[1], [0], [0], [1], [0, 0, 1, 1], [], []>} : vector<16x32xbf16>, vector<32x128xbf16>, vector<16x128xf32> -> vector<16x128xf32>
    %c0_56 = arith.constant 0 : index
    %c0_57 = arith.constant 0 : index
    %c0_58 = arith.constant 0 : index
    %212 = vector.load %arg10[%c0_56, %c0_57, %c0_58] : memref<1x1x128xf32, #tpu.memory_space<vmem>>, vector<1x1x128xf32>
    %213 = vector.shape_cast %212 : vector<1x1x128xf32> to vector<1x128xf32>
    %214 = vector.broadcast %213 : vector<1x128xf32> to vector<16x128xf32>
    %215 = arith.addf %211, %214 : vector<16x128xf32>
    %216 = arith.mulf %215, %215 : vector<16x128xf32>
    %217 = arith.mulf %215, %216 : vector<16x128xf32>
    %cst_59 = arith.constant 4.471500e-02 : f32
    %218 = vector.broadcast %cst_59 : f32 to vector<16x128xf32>
    %219 = arith.mulf %218, %217 : vector<16x128xf32>
    %220 = arith.addf %215, %219 : vector<16x128xf32>
    %cst_60 = arith.constant 0.797884583 : f32
    %221 = vector.broadcast %cst_60 : f32 to vector<16x128xf32>
    %222 = arith.mulf %221, %220 : vector<16x128xf32>
    %223 = math.tanh %222 : vector<16x128xf32>
    %cst_61 = arith.constant 1.000000e+00 : f32
    %224 = vector.broadcast %cst_61 : f32 to vector<16x128xf32>
    %225 = arith.addf %224, %223 : vector<16x128xf32>
    %cst_62 = arith.constant 5.000000e-01 : f32
    %226 = vector.broadcast %cst_62 : f32 to vector<16x128xf32>
    %227 = arith.mulf %226, %225 : vector<16x128xf32>
    %228 = arith.mulf %215, %227 : vector<16x128xf32>
    %229 = arith.truncf %228 : vector<16x128xf32> to vector<16x128xbf16>
    %c0_63 = arith.constant 0 : index
    %c0_64 = arith.constant 0 : index
    %c0_65 = arith.constant 0 : index
    %230 = vector.load %arg11[%c0_63, %c0_64, %c0_65] : memref<1x128x32xbf16, #tpu.memory_space<vmem>>, vector<1x128x32xbf16>
    %231 = vector.shape_cast %230 : vector<1x128x32xbf16> to vector<128x32xbf16>
    %cst_66 = arith.constant dense<0.000000e+00> : vector<16x32xf32>
    %232 = tpu.matmul %229, %231, %cst_66 {dimension_numbers = #tpu.dot_dimension_numbers<[1], [0], [0], [1], [0, 0, 1, 1], [], []>} : vector<16x128xbf16>, vector<128x32xbf16>, vector<16x32xf32> -> vector<16x32xf32>
    %233 = vector.broadcast %11 : vector<1x32xf32> to vector<16x32xf32>
    %234 = arith.addf %232, %233 : vector<16x32xf32>
    %235 = vector.broadcast %12 : vector<1x32xf32> to vector<16x32xf32>
    %236 = arith.mulf %235, %234 : vector<16x32xf32>
    %237 = arith.addf %185, %236 : vector<16x32xf32>
    %c0_67 = arith.constant 0 : index
    %c0_68 = arith.constant 0 : index
    %238 = vector.load %arg14[%c0_67, %c0_68] : memref<16x32xf32, #tpu.memory_space<vmem>>, vector<16x32xf32>
    tpu.vector_store %arg14[%c0_67, %c0_68], %237 {strides = array<i32>} : memref<16x32xf32, #tpu.memory_space<vmem>>, vector<16x32xf32>,
    %c1_i32 = arith.constant 1 : i32
    %239 = arith.cmpi eq, %arg1, %c1_i32 : i32
    %240 = arith.extui %239 : i1 to i32
    %c0_i32_69 = arith.constant 0 : i32
    %241 = arith.cmpi ne, %240, %c0_i32_69 : i32
    scf.if %241 {
      %c0_70 = arith.constant 0 : index
      %c0_71 = arith.constant 0 : index
      %242 = vector.load %arg5[%c0_70, %c0_71] : memref<2x32xf32, #tpu.memory_space<vmem>>, vector<2x32xf32>
      %243 = vector.extract_strided_slice %242 {offsets = [0, 0], sizes = [1, 32], strides = [1, 1]} : vector<2x32xf32> to vector<1x32xf32>
      %244 = vector.extract_strided_slice %242 {offsets = [1, 0], sizes = [1, 32], strides = [1, 1]} : vector<2x32xf32> to vector<1x32xf32>
      %cst_72 = arith.constant dense<0.000000e+00> : vector<16xf32>
      %245 = vector.multi_reduction <add>, %237, %cst_72 [1] : vector<16x32xf32> to vector<16xf32>
      %246 = vector.shape_cast %245 : vector<16xf32> to vector<16x1xf32>
      %cst_73 = arith.constant 3.200000e+01 : f32
      %247 = vector.broadcast %cst_73 : f32 to vector<16x1xf32>
      %248 = arith.divf %246, %247 : vector<16x1xf32>
      %249 = vector.broadcast %248 : vector<16x1xf32> to vector<16x32xf32>
      %250 = arith.subf %237, %249 : vector<16x32xf32>
      %251 = arith.mulf %250, %250 : vector<16x32xf32>
      %cst_74 = arith.constant dense<0.000000e+00> : vector<16xf32>
      %252 = vector.multi_reduction <add>, %251, %cst_74 [1] : vector<16x32xf32> to vector<16xf32>
      %253 = vector.shape_cast %252 : vector<16xf32> to vector<16x1xf32>
      %cst_75 = arith.constant 3.200000e+01 : f32
      %254 = vector.broadcast %cst_75 : f32 to vector<16x1xf32>
      %255 = arith.divf %253, %254 : vector<16x1xf32>
      %256 = vector.broadcast %248 : vector<16x1xf32> to vector<16x32xf32>
      %257 = arith.subf %237, %256 : vector<16x32xf32>
      %cst_76 = arith.constant 9.99999997E-7 : f32
      %258 = vector.broadcast %cst_76 : f32 to vector<16x1xf32>
      %259 = arith.addf %255, %258 : vector<16x1xf32>
      %260 = math.rsqrt %259 : vector<16x1xf32>
      %261 = vector.broadcast %260 : vector<16x1xf32> to vector<16x32xf32>
      %262 = arith.mulf %257, %261 : vector<16x32xf32>
      %263 = vector.broadcast %243 : vector<1x32xf32> to vector<16x32xf32>
      %264 = arith.mulf %262, %263 : vector<16x32xf32>
      %265 = vector.broadcast %244 : vector<1x32xf32> to vector<16x32xf32>
      %266 = arith.addf %264, %265 : vector<16x32xf32>
      %c0_77 = arith.constant 0 : index
      %c0_78 = arith.constant 0 : index
      %c0_79 = arith.constant 0 : index
      %267 = vector.load %arg13[%c0_77, %c0_78, %c0_79] : memref<1x16x32xf32, #tpu.memory_space<vmem>>, vector<1x16x32xf32>
      %268 = vector.shape_cast %267 : vector<1x16x32xf32> to vector<16x32xf32>
      %269 = vector.shape_cast %266 : vector<16x32xf32> to vector<1x16x32xf32>
      tpu.vector_store %arg13[%c0_77, %c0_78, %c0_79], %269 {strides = array<i32>} : memref<1x16x32xf32, #tpu.memory_space<vmem>>, vector<1x16x32xf32>,
    } else {
    }
    return
  }
  func.func @transform_0(%arg0: i32, %arg1: i32) -> (i32, i32, i32, i32) {
    %c0_i32 = arith.constant 0 : i32
    %c0_i32_0 = arith.constant 0 : i32
    %c0_i32_1 = arith.constant 0 : i32
    %c0_i32_2 = arith.constant 0 : i32
    return %arg0, %c0_i32, %c0_i32_0, %c0_i32_1 : i32, i32, i32, i32
  }
  func.func @transform_1(%arg0: i32, %arg1: i32) -> (i32, i32) {
    %c0_i32 = arith.constant 0 : i32
    %c0_i32_0 = arith.constant 0 : i32
    %c0_i32_1 = arith.constant 0 : i32
    return %c0_i32, %c0_i32_0 : i32, i32
  }
  func.func @transform_2(%arg0: i32, %arg1: i32) -> (i32, i32) {
    %c0_i32 = arith.constant 0 : i32
    %c0_i32_0 = arith.constant 0 : i32
    %c0_i32_1 = arith.constant 0 : i32
    return %c0_i32, %c0_i32_0 : i32, i32
  }
  func.func @transform_3(%arg0: i32, %arg1: i32) -> (i32, i32) {
    %c0_i32 = arith.constant 0 : i32
    %c0_i32_0 = arith.constant 0 : i32
    %c0_i32_1 = arith.constant 0 : i32
    return %c0_i32, %c0_i32_0 : i32, i32
  }
  func.func @transform_4(%arg0: i32, %arg1: i32) -> (i32, i32, i32) {
    %c0_i32 = arith.constant 0 : i32
    %c0_i32_0 = arith.constant 0 : i32
    %c0_i32_1 = arith.constant 0 : i32
    return %arg1, %c0_i32, %c0_i32_0 : i32, i32, i32
  }
  func.func @transform_5(%arg0: i32, %arg1: i32) -> (i32, i32, i32) {
    %c0_i32 = arith.constant 0 : i32
    %c0_i32_0 = arith.constant 0 : i32
    %c0_i32_1 = arith.constant 0 : i32
    return %arg1, %c0_i32, %c0_i32_0 : i32, i32, i32
  }
  func.func @transform_6(%arg0: i32, %arg1: i32) -> (i32, i32, i32, i32) {
    %c0_i32 = arith.constant 0 : i32
    %c0_i32_0 = arith.constant 0 : i32
    %c0_i32_1 = arith.constant 0 : i32
    %c0_i32_2 = arith.constant 0 : i32
    return %arg1, %c0_i32, %c0_i32_0, %c0_i32_1 : i32, i32, i32, i32
  }
  func.func @transform_7(%arg0: i32, %arg1: i32) -> (i32, i32, i32) {
    %c0_i32 = arith.constant 0 : i32
    %c0_i32_0 = arith.constant 0 : i32
    %c0_i32_1 = arith.constant 0 : i32
    return %arg1, %c0_i32, %c0_i32_0 : i32, i32, i32
  }
  func.func @transform_8(%arg0: i32, %arg1: i32) -> (i32, i32, i32) {
    %c0_i32 = arith.constant 0 : i32
    %c0_i32_0 = arith.constant 0 : i32
    %c0_i32_1 = arith.constant 0 : i32
    return %arg1, %c0_i32, %c0_i32_0 : i32, i32, i32
  }
  func.func @transform_9(%arg0: i32, %arg1: i32) -> (i32, i32, i32) {
    %c0_i32 = arith.constant 0 : i32
    %c0_i32_0 = arith.constant 0 : i32
    %c0_i32_1 = arith.constant 0 : i32
    return %arg1, %c0_i32, %c0_i32_0 : i32, i32, i32
  }
  func.func @transform_10(%arg0: i32, %arg1: i32) -> (i32, i32, i32) {
    %c0_i32 = arith.constant 0 : i32
    %c0_i32_0 = arith.constant 0 : i32
    %c0_i32_1 = arith.constant 0 : i32
    return %arg1, %c0_i32, %c0_i32_0 : i32, i32, i32
  }
  func.func @transform_11(%arg0: i32, %arg1: i32) -> (i32, i32, i32) {
    %c0_i32 = arith.constant 0 : i32
    %c0_i32_0 = arith.constant 0 : i32
    %c0_i32_1 = arith.constant 0 : i32
    return %arg0, %c0_i32, %c0_i32_0 : i32, i32, i32
  }
}

</mosaic_0001>

<bundles_post_ra>
// kernel: dino_v2_forward.1
= control target key start
LH: loop header
LB: loop body
LE: loop exit
PB: predicated region body
PF: predicated region fallthrough
CT: control target
= control target key end

     0   :  { %s2929_s17 = smov 0   ;;  %s2931_s18 = smov 0   ;;  %s3388_s0 = inlined_call_operand.vmem [shape: f32[2,2,8,256], index: 0, kind: input, shape index: {}]   ;;  %s3389_s1 = inlined_call_operand.vmem [shape: bf16[256,32], index: 1, kind: input, shape index: {}]   ;;  %s3390_s2 = inlined_call_operand.vmem [shape: f32[8,32], index: 2, kind: input, shape index: {}]   ;;  %s3391_s3 = inlined_call_operand.vmem [shape: f32[2,32], index: 3, kind: input, shape index: {}]   ;;  %s3392_s4 = inlined_call_operand.vmem [shape: bf16[2,32,96], index: 4, kind: input, shape index: {}]   ;;  %s3393_s5 = inlined_call_operand.vmem [shape: f32[2,1,96], index: 5, kind: input, shape index: {}]   ;;  %s3394_s6 = inlined_call_operand.vmem [shape: bf16[2,4,8,32], index: 6, kind: input, shape index: {}]   ;;  %s3395_s7 = inlined_call_operand.vmem [shape: bf16[2,32,128], index: 7, kind: input, shape index: {}]   ;;  %s3396_s8 = inlined_call_operand.vmem [shape: f32[2,1,128], index: 8, kind: input, shape index: {}]   ;;  %s3397_s9 = inlined_call_operand.vmem [shape: bf16[2,128,32], index: 9, kind: input, shape index: {}]   ;;  %s3398_s10 = inlined_call_operand.vmem [shape: f32[2,8,32], index: 10, kind: input, shape index: {}]   ;;  %s3399_s11 = inlined_call_operand.vmem [shape: f32[2,16,32], index: 11, kind: output, shape index: {}]  }
   0x1   :  { %3403 = sst [smem:[#allocation8_spill]] %s3388_s0  ;;  %s2933_s19 = smov 0  }
   0x2   :  { %3404 = sst [smem:[#allocation9_spill]] %s3392_s4  ;;  %s2935_s20 = smov 0  }
   0x3   :  { %3405 = sst [smem:[#allocation10_spill]] %s3394_s6  ;;  %s2937_s21 = smov 0  }
   0x4 LB: > { %3406 = sst [smem:[#allocation3_spill]] %s2845_s19  ;;  %s30_s22 = sadd.s32 1, %s2845_s19  ;;  %s2853_s21 = sphi %s2937_s21, %s21_s21   ;;  %s2849_s20 = sphi %s2935_s20, %s3419_s20   ;;  %s2845_s19 = sphi %s2933_s19, %s3418_s19   ;;  %s2841_s18 = sphi %s2931_s18, %s3417_s18   ;;  %s2837_s17 = sphi %s2929_s17, %s3416_s17  }
   0x5   : > { %3407 = sst [smem:[#allocation4_spill]] %s2849_s20  ;;  %s33_s23 = sadd.s32 1, %s2849_s20 }
   0x6   : > { %3408 = sst [smem:[#allocation5_spill]] %s2853_s21  ;;  %p31_p0 = scmp.ge.s32.totalorder %s30_s22, 2 }
   0x7   : > { %p2368_p1 = scmp.ge.s32.totalorder %s2853_s21, 1  ;;  %p414_p2 = scmp.lt.s32.totalorder %s2853_s21, 5 }
   0x8   : > { %s3421_s22 = smov (%p31_p0, %s30_s22), 0  ;;  %s3423_s23 = smov (!%p31_p0, %s33_s23), %s2849_s20 }
   0x9   : > { %3409 = sst [smem:[#allocation6_spill]] %s3421_s22  ;;  %p415_p3 = pnand %p2368_p1, %p414_p2 }
   0xa   : > { %p35_p4 = scmp.ge.s32.totalorder %s3423_s23, 2  ;;  %p484_p5 = scmp.lt.s32.totalorder (!%p415_p3), %s2841_s18, 1 }
   0xb   : > { %418 = sbr.rel (%p415_p3) target bundleno = 4819 (0x12d3), region = 64  ;;  %p489_p6 = scmp.lt.s32.totalorder (!%p415_p3), %s2837_s17, 1 }
   0xc   : > { %s3425_s23 = smov (%p35_p4, %s3423_s23), 0  ;;  %s3411_s0 = sld [smem:[#allocation8_spill]] (!%p415_p3) }
   0xd   : > { %3410 = sst [smem:[#allocation7_spill]] %s3425_s23  ;;  %p2382_p7 = scmp.ne.s32.totalorder (!%p415_p3), %s2837_s17, 0 }
   0xe   : > { %s3412_s4 = sld [smem:[#allocation9_spill]] (!%p415_p3) }
   0xf   : > { %s3413_s6 = sld [smem:[#allocation10_spill]] (!%p415_p3) }
  0x10   : > { %s3427_s18 = smov (!%p484_p5, %s2841_s18), 1 }
  0x11   : > { %s2963_s24 = scalar_select %p489_p6, %s2837_s17, 1 }
  0x12   : > { %s2442_s25 = sshll.u32 %s3427_s18, 5  ;;  %s2447_s26 = sshll.u32 %s3427_s18, 4 }
  0x13   : > { %s2968_s29 = scalar_lea.vmem %s3411_s0, %s2442_s25  ;;  %s2443_s30 = sshll.u32 %s2963_s24, 4 }
  0x14   : > { %s2974_s14 = scalar_lea.vmem %s3412_s4, %s2443_s30  ;;  %s2988_s25 = scalar_lea.vmem %s3395_s7, %s2443_s30 }
  0x15   : > { %s2983_s19 = scalar_lea.vmem %s3413_s6, %s2443_s30  ;;  %s509_s12 = scalar_lea.vmem %s3396_s8, %s2963_s24 }
  0x16   : > { %s2446_s13 = sshll.u32 %s2963_s24, 6  ;;  %s2379_s16 = sshll.u32 %s2963_s24, 3 }
  0x17   : > { %s2998_s15 = scalar_lea.vmem %s3397_s9, %s2446_s13  ;;  %s3004_s22 = scalar_lea.vmem %s3398_s10, %s2379_s16 }
  0x18   : > { %s3009_s30 = scalar_lea.vmem %s3399_s11, %s2447_s26  ;;  %528 = sbr.rel (%p2382_p7) target bundleno = 266 (0x10a), region = 68 }
  0x1d   : > { %v2739_v0 = vld [vmem:[%s3389_s1 + $0x78] sm:$0xff]   ;;  %v2741_v2 = vld [vmem:[%s3389_s1 + $0x70] sm:$0xff]   ;;  %v2743_v4 = vld [vmem:[%s3389_s1 + $0x68] sm:$0xff]   ;;  %vm707_vm0 = vcmask 261120  }
  0x1e   : > { %v2740_v1 = vld [vmem:[%s3389_s1 + $0x38] sm:$0xff]   ;;  %2452 = vmatprep.subr.bf16.mxu0 %v2739_v0  ;;  %v2742_v3 = vld [vmem:[%s3389_s1 + $0x30] sm:$0xff]   ;;  %v2744_v5 = vld [vmem:[%s3389_s1 + $0x28] sm:$0xff]  }
  0x1f   : > { %2453 = vmatpush3.bf16.msra.mxu0 %v2740_v1  ;;  %v2745_v6 = vld [vmem:[%s3389_s1 + $0x60] sm:$0xff]   ;;  %v2747_v8 = vld [vmem:[%s3389_s1 + $0x58] sm:$0xff]   ;;  %v2749_v10 = vld [vmem:[%s3389_s1 + $0x50] sm:$0xff]  }
  0x20   : > { %2454 = vmatprep.subr.bf16.mxu0 %v2741_v2  ;;  %v2746_v7 = vld [vmem:[%s3389_s1 + $0x20] sm:$0xff]   ;;  %v2748_v9 = vld [vmem:[%s3389_s1 + $0x18] sm:$0xff]   ;;  %v530_v11 = vld [vmem:[%s2968_s29 + $0x8] sm:$0xff] }
  0x21   : > { %v532_v12 = vld [vmem:[%s2968_s29 + $0x18] sm:$0xff]  ;;  %v2750_v14 = vld [vmem:[%s3389_s1 + $0x10] sm:$0xff]   ;;  %v2751_v15 = vld [vmem:[%s3389_s1 + $0x48] sm:$0xff]  }
  0x22   : > { %v534_v13 = vpack.c.bf16 %v532_v12, %v530_v11  ;;  %v2752_v16 = vld [vmem:[%s3389_s1 + $0x8] sm:$0xff]   ;;  %v2753_v17 = vld [vmem:[%s3389_s1 + $0x40] sm:$0xff]   ;;  %v531_v20 = vld [vmem:[%s2968_s29 + $0x10] sm:$0xff] }
  0x23   : > { %2455 = vmatpush3.bf16.msra.mxu0 %v2742_v3  ;;  %v2754_v18 = vld [vmem:[%s3389_s1] sm:$0xff]  }
  0x24   : > { %2456 = vmatprep.subr.bf16.mxu0 %v2743_v4  ;;  %695 = vmatprep.mubr.bf16.mxu0 %v534_v13  ;;  %v529_v19 = vld [vmem:[%s2968_s29] sm:$0xff] }
  0x25   : > { %v533_v21 = vpack.c.bf16 %v531_v20, %v529_v19  ;;  %v704_v24 = vld [vmem:[%s3390_s2] sm:$0xff] }
  0x27   : > { %2457 = vmatpush3.bf16.msra.mxu0 %v2744_v5 }
  0x28   : > { %2458 = vmatprep.subr.bf16.mxu0 %v2745_v6 }
  0x2b   : > { %2459 = vmatpush3.bf16.msra.mxu0 %v2746_v7 }
  0x2c   : > { %2460 = vmatprep.subr.bf16.mxu0 %v2747_v8 }
  0x2f   : > { %2461 = vmatpush3.bf16.msra.mxu0 %v2748_v9 }
  0x30   : > { %2462 = vmatprep.subr.bf16.mxu0 %v2749_v10 }
  0x33   : > { %2463 = vmatpush3.bf16.msra.mxu0 %v2750_v14 }
  0x34   : > { %2464 = vmatprep.subr.bf16.mxu0 %v2751_v15 }
  0x37   : > { %2465 = vmatpush3.bf16.msra.mxu0 %v2752_v16 }
  0x38   : > { %2466 = vmatprep.subr.bf16.mxu0 %v2753_v17 }
  0x3b   : > { %2467 = vmatpush3.bf16.msra.mxu0 %v2754_v18 }
  0x3e   : > { %696 = vmatmul.mubr.bf16.vlgmr.msra.gmra.mxu0 %v533_v21 }
  0xfe   : > { %v2468_v22 = vpop.f32.mrf.mxu0 }
 0x100   : > { %v2469_v23 = vpop.f32.mrf.mxu0 }
 0x101   : > { %v2470_v25 = vadd.f32 %v2469_v23, %v2468_v22 }
 0x102   : > { %v2471_v26 = vpop.f32.mrf.mxu0 }
 0x103   : > { %v705_v27 = vadd.f32 %v2470_v25, %v704_v24 }
 0x104   : > { %v2472_v28 = vpop.f32.mrf.mxu0 }
 0x105   : > { %708 = vst.msk [vmem:[#allocation2] sm:$0xff] %vm707_vm0, %v705_v27  ;;  %v2473_v29 = vadd.f32 %v2472_v28, %v2471_v26 }
 0x107   : > { %v706_v30 = vadd.f32 %v2473_v29, %v704_v24 }
 0x109   : > { %709 = vst.msk [vmem:[#allocation2 + $0x8] sm:$0xff] %vm707_vm0, %v706_v30 }
 0x10a PF: > { %vm713_vm1 = vcmask 261120   ;;  %v2755_v45 = vld [vmem:[%s2974_s14 + $0x8] sm:$0xff]   ;;  %v2855_v46 = vmov 0.0   ;;  %vm2856_vm2 = vmmov 0   ;;  %v2756_v47 = vld [vmem:[%s2974_s14] sm:$0xff]   ;;  %v741_v54 = vlaneseq  ;;  %s2857_s20 = smov 96  }
 0x10b   : > { %2529 = vmatprep.subr.bf16.mxu1 %v2855_v46  ;;  %2533 = vmatprep.mubr.msk.bf16.mxu1 %vm2856_vm2, %v2855_v46  ;;  %v3093_v57 = vld [vmem:[%s3004_s22] sm:$0xff]  ;;  %s3414_s22 = scalar_lea.vmem %s3393_s5, %s2963_s24  ;;  %vm844_vm3 = vcmask 64512   ;;  %v2858_v24 = vmov -1e+30   ;;  %s2859_s21 = smov 64   ;;  %vm969_vm5 = vcmask 1043456  }
 0x10c   : > { %v3067_v31 = vld [vmem:[#allocation2] sm:$0xff]  ;;  %2530 = vmatpush3.bf16.msra.mxu1 %v2755_v45  ;;  %2555 = vmatprep.subr.bf16.mxu0 %v2855_v46  ;;  %v3089_v55 = vshrl.u32 %v741_v54, 7  ;;  %v822_v23 = vand.u32 127, %v741_v54  ;;  %s2860_s18 = smov 88   ;;  %s2861_s27 = smov 120  }
 0x10d   : > { %v714_v33 = vsel %vm713_vm1, %v3067_v31, 0.0  ;;  %2531 = vmatprep.subr.bf16.mxu1 %v2855_v46  ;;  %2557 = vmatprep.mubr.msk.bf16.mxu0 %vm2856_vm2, %v2855_v46  ;;  %v2399_v6 = vld [vmem:[%s3414_s22] ss:$0 sm:$0xff]  ;;  %s2862_s0 = smov 56   ;;  %s2863_s4 = smov 80  }
 0x10e   : > { %715 = vadd.xlane.f32.xlu0 %v714_v33  ;;  %v743_v56 = vsub.s32 0, %v3089_v55  ;;  %v749_v61 = vsub.s32 1, %v3089_v55  ;;  %vm823_vm4 = vcmp.lt.s32.totalorder %v822_v23, 5  ;;  %s2864_s23 = smov 112   ;;  %s2865_s28 = smov 48  }
 0x10f   : > { %v3132_v25 = vsel %vm823_vm4, 0.0, %v2858_v24  ;;  %s2866_s6 = smov 72   ;;  %s2867_s26 = smov 104  }
 0x110   : > { %v3069_v32 = vld [vmem:[#allocation2 + $0x8] sm:$0xff]  ;;  %2532 = vmatpush3.bf16.msra.mxu1 %v2756_v47  ;;  %v744_v60 = vrot.slane %v3093_v57, %v743_v56  ;;  %v750_v1 = vrot.slane %v3093_v57, %v749_v61  ;;  %s2868_s13 = smov 40   ;;  %p2439_p8 = scmp.ne.s32.totalorder %s2837_s17, 1 }
 0x111   : > { %v717_v34 = vsel %vm713_vm1, %v3069_v32, 0.0  ;;  %2537 = vmatprep.subr.bf16.mxu1 %v2855_v46 }
 0x112   : > { %718 = vadd.xlane.f32.xlu0 %v717_v34 }
 0x197   : > { %v716_v35 = vpop.xlane.xlu0 %715 }
 0x198   : > { %v721_v36 = vmul.f32 0.03125, %v716_v35 }
 0x19a   : > { %v723_v37 = vsub.f32 %v3067_v31, %v721_v36 }
 0x19b   : > { %v719_v38 = vpop.xlane.xlu0 %718 }
 0x19c   : > { %v722_v39 = vmul.f32 0.03125, %v719_v38  ;;  %v725_v40 = vmul.f32 %v723_v37, %v723_v37 }
 0x19e   : > { %v724_v41 = vsub.f32 %v3069_v32, %v722_v39  ;;  %v727_v42 = vsel %vm713_vm1, %v725_v40, 0.0 }
 0x19f   : > { %728 = vadd.xlane.f32.xlu1 %v727_v42 }
 0x1a0   : > { %v726_v43 = vmul.f32 %v724_v41, %v724_v41 }
 0x1a2   : > { %v730_v44 = vsel %vm713_vm1, %v726_v43, 0.0 }
 0x1a3   : > { %731 = vadd.xlane.f32.xlu1 %v730_v44 }
 0x228   : > { %v729_v48 = vpop.xlane.xlu1 %728 }
 0x229   : > { %v733_v49 = vmul.f32 0.03125, %v729_v48 }
 0x22b   : > { %v735_v50 = vadd.f32 1e-06, %v733_v49 }
 0x22c   : > { %v732_v51 = vpop.xlane.xlu1 %731 }
 0x22d   : > { %2767 = vrsqrt.f32 %v735_v50  ;;  %v734_v52 = vmul.f32 0.03125, %v732_v51 }
 0x22f   : > { %v736_v53 = vadd.f32 1e-06, %v734_v52 }
 0x231   : > { %2769 = vrsqrt.f32 %v736_v53 }
 0x23a   : > { %v2768_v58 = vpop.eup %2767 }
 0x23b   : > { %v739_v59 = vmul.f32 %v2768_v58, %v723_v37 }
 0x23d   : > { %v745_v0 = vmul.f32 %v744_v60, %v739_v59 }
 0x23e   : > { %v2770_v62 = vpop.eup %2769 }
 0x23f   : > { %v740_v63 = vmul.f32 %v2770_v62, %v724_v41  ;;  %v751_v3 = vadd.f32 %v750_v1, %v745_v0 }
 0x241   : > { %v746_v2 = vmul.f32 %v744_v60, %v740_v63 }
 0x243   : > { %v752_v4 = vadd.f32 %v750_v1, %v746_v2 }
 0x245   : > { %v753_v5 = vpack.c.bf16 %v752_v4, %v751_v3 }
 0x247   : > { %2534 = vmatmul.mubr.msk.bf16.vlgmr.msra.gmra.mxu1 %vm713_vm1, %v753_v5 }
 0x248   : > { %2539 = vmatprep.mubr.msk.bf16.mxu1 %vm2856_vm2, %v2855_v46 }
 0x307   : > { %v814_v7 = vpop.f32.mrf.mxu1 }
 0x308   : > { %v815_v8 = vadd.f32 %v2399_v6, %v814_v7 }
 0x309   : > { %v2535_v9 = vpop.f32.mrf.mxu1 }
 0x30a   : > { %v3110_v10 = vpack.c.bf16 %v815_v8, %v815_v8  ;;  %v829_v17 = vmul.f32 0.35355338, %v815_v8 }
 0x30b   : > { %v817_v11 = vpop.f32.mrf.mxu1 }
 0x30c   : > { %v818_v12 = vadd.f32 %v2399_v6, %v817_v11  ;;  %842 = vrot.lane.b32.xlu0 %v3110_v10, %s2857_s20  ;;  %v3118_v19 = vpack.c.bf16 %v829_v17, %v829_v17 }
 0x30d   : > { %v2536_v13 = vpop.f32.mrf.mxu1 }
 0x30e   : > { %v3113_v14 = vpack.c.bf16 %v818_v12, %v818_v12  ;;  %v830_v21 = vmul.f32 0.35355338, %v818_v12 }
 0x310   : > { %892 = vrot.lane.b32.xlu1 %v3113_v14, %s2857_s20  ;;  %v3126_v22 = vpack.c.bf16 %v830_v21, %v830_v21 }
 0x37e   : > { %v843_v15 = vpop.permute.xlu0 %842 }
 0x37f   : > { %v849_v16 = vsel %vm844_vm3, %v843_v15, 0 }
 0x380   : > { %2538 = vmatpush3.bf16.xpose.msra.mxu1 %v849_v16 }
 0x381   : > { %2543 = vmatprep.subr.bf16.mxu1 %v2855_v46 }
 0x382   : > { %v893_v18 = vpop.permute.xlu1 %892 }
 0x383   : > { %v898_v20 = vsel %vm844_vm3, %v893_v18, 0 }
 0x387   : > { %2540 = vmatmul.mubr.msk.bf16.vlgmr.msra.gmra.mxu1 %vm844_vm3, %v3118_v19 }
 0x388   : > { %2544 = vmatpush3.bf16.xpose.msra.mxu1 %v898_v20  ;;  %2545 = vmatprep.mubr.msk.bf16.mxu1 %vm2856_vm2, %v2855_v46 }
 0x389   : > { %2549 = vmatprep.subr.bf16.mxu1 %v2855_v46 }
 0x38f   : > { %2546 = vmatmul.mubr.msk.bf16.vlgmr.msra.gmra.mxu1 %vm844_vm3, %v3126_v22 }
 0x390   : > { %2551 = vmatprep.mubr.msk.bf16.mxu1 %vm2856_vm2, %v2855_v46 }
 0x447   : > { %v885_v26 = vpop.f32.mrf.mxu1 }
 0x448   : > { %v886_v27 = vadd.f32 %v885_v26, %v3132_v25 }
 0x449   : > { %v2541_v28 = vpop.f32.mrf.mxu1 }
 0x44a   : > { %v940_v29 = vsel %vm844_vm3, %v886_v27, -inf }
 0x44b   : > { %941 = vmax.xlane.f32.xlu1 %v940_v29  ;;  %v888_v30 = vpop.f32.mrf.mxu1 }
 0x44d   : > { %v2542_v33 = vpop.f32.mrf.mxu1 }
 0x44f   : > { %v934_v34 = vpop.f32.mrf.mxu1 }
 0x450   : > { %v935_v35 = vadd.f32 %v934_v34, %v3132_v25 }
 0x451   : > { %v2547_v36 = vpop.f32.mrf.mxu1 }
 0x452   : > { %v943_v37 = vsel %vm844_vm3, %v935_v35, -inf }
 0x453   : > { %944 = vmax.xlane.f32.xlu0 %v943_v37  ;;  %v937_v38 = vpop.f32.mrf.mxu1 }
 0x455   : > { %v2548_v39 = vpop.f32.mrf.mxu1 }
 0x45c   : > { %1013 = vrot.lane.b32.xlu1 %v3113_v14, %s2859_s21 }
 0x460   : > { %1064 = vrot.lane.b32.xlu1 %v3110_v10, %s2860_s18 }
 0x4d4   : > { %v942_v40 = vpop.xlane.xlu1 %941 }
 0x4d5   : > { %v946_v41 = vsub.f32 %v886_v27, %v942_v40 }
 0x4d7   : > { %v948_v42 = vmul.f32 1.442695, %v946_v41 }
 0x4d8   : > { %v1014_v43 = vpop.permute.xlu1 %1013 }
 0x4d9   : > { %2771 = vpow2.f32 %v948_v42  ;;  %v1019_v44 = vsel %vm969_vm5, %v1014_v43, 0 }
 0x4da   : > { %2556 = vmatpush3.bf16.msra.mxu0 %v1019_v44 }
 0x4db   : > { %2567 = vmatprep.subr.bf16.mxu0 %v2855_v46 }
 0x4dc   : > { %v945_v45 = vpop.xlane.xlu0 %944  ;;  %v1065_v54 = vpop.permute.xlu1 %1064 }
 0x4dd   : > { %v947_v47 = vsub.f32 %v935_v35, %v945_v45  ;;  %v1070_v1 = vsel %vm844_vm3, %v1065_v54, 0 }
 0x4df   : > { %v950_v48 = vmul.f32 1.442695, %v947_v47 }
 0x4e1   : > { %2773 = vpow2.f32 %v950_v48 }
 0x4e6   : > { %v2772_v49 = vpop.eup %2771 }
 0x4e7   : > { %v952_v50 = vsel %vm844_vm3, %v2772_v49, 0.0 }
 0x4e8   : > { %953 = vadd.xlane.f32.xlu0 %v952_v50 }
 0x4ee   : > { %v2774_v51 = vpop.eup %2773 }
 0x4ef   : > { %v955_v52 = vsel %vm844_vm3, %v2774_v51, 0.0 }
 0x4f0   : > { %956 = vadd.xlane.f32.xlu1 %v955_v52 }
 0x4fe   : > { %964 = vrot.lane.b32.xlu0 %v3110_v10, %s2859_s21 }
 0x501   : > { %1114 = vrot.lane.b32.xlu1 %v3113_v14, %s2860_s18 }
 0x502   : > { %1062 = vrot.lane.b32.xlu0 %v3118_v19, %s2861_s27 }
 0x505   : > { %1112 = vrot.lane.b32.xlu1 %v3126_v22, %s2861_s27 }
 0x571   : > { %v954_v53 = vpop.xlane.xlu0 %953 }
 0x572   : > { %2775 = vrcp.f32 %v954_v53 }
 0x575   : > { %v965_v58 = vpop.permute.xlu0 %964 }
 0x576   : > { %v971_v59 = vsel %vm969_vm5, %v965_v58, 0 }
 0x577   : > { %2550 = vmatpush3.bf16.msra.mxu1 %v971_v59 }
 0x578   : > { %2561 = vmatprep.subr.bf16.mxu1 %v2855_v46 }
 0x579   : > { %v957_v60 = vpop.xlane.xlu1 %956  ;;  %v1063_v6 = vpop.permute.xlu0 %1062 }
 0x57a   : > { %2777 = vrcp.f32 %v957_v60 }
 0x57d   : > { %v1115_v4 = vpop.permute.xlu1 %1114 }
 0x57e   : > { %v1120_v7 = vsel %vm844_vm3, %v1115_v4, 0 }
 0x57f   : > { %v2776_v62 = vpop.eup %2775 }
 0x580   : > { %v960_v63 = vmul.f32 %v2776_v62, %v2772_v49  ;;  %v825_v62 = vld [vmem:[%s2983_s19] sm:$0xf] }
 0x581   : > { %v1113_v8 = vpop.permute.xlu1 %1112 }
 0x582   : > { %v962_v0 = vpack.c.bf16 %v960_v63, %v960_v63 }
 0x584   : > { %2552 = vmatmul.mubr.msk.bf16.vlgmr.msra.gmra.mxu1 %vm844_vm3, %v962_v0 }
 0x585   : > { %2562 = vmatpush3.bf16.xpose.msra.mxu1 %v1070_v1  ;;  %2563 = vmatprep.mubr.msk.bf16.mxu1 %vm2856_vm2, %v2855_v46  ;;  %v1334_v1 = vsel %vm969_vm5, %v825_v62, 0 }
 0x586   : > { %2573 = vmatprep.subr.bf16.mxu1 %v2855_v46 }
 0x587   : > { %v2778_v2 = vpop.eup %2777 }
 0x588   : > { %v961_v3 = vmul.f32 %v2778_v2, %v2774_v51 }
 0x58a   : > { %v963_v5 = vpack.c.bf16 %v961_v3, %v961_v3 }
 0x58c   : > { %2558 = vmatmul.mubr.msk.bf16.vlgmr.msra.gmra.mxu0 %vm844_vm3, %v963_v5  ;;  %2564 = vmatmul.mubr.msk.bf16.vlgmr.msra.gmra.mxu1 %vm844_vm3, %v1063_v6  ;;  %v826_v6 = vld [vmem:[%s2983_s19 + $0x4] sm:$0xf] }
 0x58d   : > { %2568 = vmatpush3.bf16.xpose.msra.mxu0 %v1120_v7  ;;  %2569 = vmatprep.mubr.msk.bf16.mxu0 %vm2856_vm2, %v2855_v46  ;;  %v1287_v7 = vsel %vm969_vm5, %v826_v6, 0 }
 0x58e   : > { %2579 = vmatprep.subr.bf16.mxu0 %v2855_v46  ;;  %2575 = vmatprep.mubr.msk.bf16.mxu1 %vm2856_vm2, %v2855_v46 }
 0x594   : > { %2570 = vmatmul.mubr.msk.bf16.vlgmr.msra.gmra.mxu0 %vm844_vm3, %v1113_v8 }
 0x595   : > { %2581 = vmatprep.mubr.msk.bf16.mxu0 %vm2856_vm2, %v2855_v46 }
 0x644   : > { %v3166_v9 = vpop.f32.mrf.mxu1 }
 0x646   : > { %v2553_v11 = vpop.f32.mrf.mxu1 }
 0x648   : > { %v1010_v12 = vpop.f32.mrf.mxu1 }
 0x64a   : > { %v2554_v13 = vpop.f32.mrf.mxu1 }
 0x64c   : > { %v3168_v15 = vpop.f32.mrf.mxu0  ;;  %v1106_v16 = vpop.f32.mrf.mxu1 }
 0x64d   : > { %v1061_v17 = vpack.c.bf16 %v3168_v15, %v3166_v9  ;;  %v1107_v18 = vadd.f32 %v1106_v16, %v3132_v25 }
 0x64e   : > { %v2559_v20 = vpop.f32.mrf.mxu0  ;;  %v2565_v21 = vpop.f32.mrf.mxu1 }
 0x64f   : > { %v1162_v23 = vsel %vm844_vm3, %v1107_v18, -inf }
 0x650   : > { %v1058_v24 = vpop.f32.mrf.mxu0  ;;  %1163 = vmax.xlane.f32.xlu0 %v1162_v23  ;;  %v1109_v26 = vpop.f32.mrf.mxu1 }
 0x652   : > { %v2560_v27 = vpop.f32.mrf.mxu0  ;;  %v2566_v28 = vpop.f32.mrf.mxu1 }
 0x654   : > { %v1156_v29 = vpop.f32.mrf.mxu0 }
 0x655   : > { %v1157_v30 = vadd.f32 %v1156_v29, %v3132_v25 }
 0x656   : > { %v2571_v33 = vpop.f32.mrf.mxu0 }
 0x657   : > { %v1165_v34 = vsel %vm844_vm3, %v1157_v30, -inf }
 0x658   : > { %1166 = vmax.xlane.f32.xlu1 %v1165_v34  ;;  %v1159_v35 = vpop.f32.mrf.mxu0 }
 0x65a   : > { %v2572_v36 = vpop.f32.mrf.mxu0 }
 0x669   : > { %1234 = vrot.lane.b32.xlu1 %v3113_v14, %s2862_s0 }
 0x66d   : > { %1379 = vrot.lane.b32.xlu1 %v3110_v10, %s2863_s4 }
 0x671   : > { %1429 = vrot.lane.b32.xlu1 %v3113_v14, %s2863_s4 }
 0x675   : > { %1427 = vrot.lane.b32.xlu1 %v3126_v22, %s2864_s23 }
 0x6d9   : > { %v1164_v37 = vpop.xlane.xlu0 %1163 }
 0x6da   : > { %v1168_v38 = vsub.f32 %v1107_v18, %v1164_v37 }
 0x6dc   : > { %v1170_v39 = vmul.f32 1.442695, %v1168_v38 }
 0x6de   : > { %2779 = vpow2.f32 %v1170_v39 }
 0x6e1   : > { %v1167_v40 = vpop.xlane.xlu1 %1166 }
 0x6e2   : > { %v1169_v41 = vsub.f32 %v1157_v30, %v1167_v40 }
 0x6e4   : > { %v1172_v42 = vmul.f32 1.442695, %v1169_v41 }
 0x6e5   : > { %v1235_v43 = vpop.permute.xlu1 %1234 }
 0x6e6   : > { %2781 = vpow2.f32 %v1172_v42  ;;  %v1240_v44 = vsel %vm969_vm5, %v1235_v43, 0 }
 0x6e7   : > { %2580 = vmatpush3.bf16.msra.mxu0 %v1240_v44 }
 0x6e8   : > { %2591 = vmatprep.subr.bf16.mxu0 %v2855_v46 }
 0x6e9   : > { %v1380_v2 = vpop.permute.xlu1 %1379 }
 0x6eb   : > { %v2780_v45 = vpop.eup %2779 }
 0x6ec   : > { %v1174_v47 = vsel %vm844_vm3, %v2780_v45, 0.0 }
 0x6ed   : > { %1175 = vadd.xlane.f32.xlu0 %v1174_v47  ;;  %v1430_v3 = vpop.permute.xlu1 %1429 }
 0x6ee   : > { %v1435_v4 = vsel %vm844_vm3, %v1430_v3, 0 }
 0x6f1   : > { %v1428_v5 = vpop.permute.xlu1 %1427 }
 0x6f3   : > { %v2782_v48 = vpop.eup %2781 }
 0x6f4   : > { %v1177_v49 = vsel %vm844_vm3, %v2782_v48, 0.0 }
 0x6f5   : > { %1178 = vadd.xlane.f32.xlu0 %v1177_v49 }
 0x70b   : > { %1186 = vrot.lane.b32.xlu0 %v3110_v10, %s2862_s0 }
 0x70f   : > { %1377 = vrot.lane.b32.xlu0 %v3118_v19, %s2864_s23 }
 0x776   : > { %v1176_v50 = vpop.xlane.xlu0 %1175 }
 0x777   : > { %2783 = vrcp.f32 %v1176_v50 }
 0x77e   : > { %v1179_v51 = vpop.xlane.xlu0 %1178 }
 0x77f   : > { %2785 = vrcp.f32 %v1179_v51 }
 0x782   : > { %v1187_v52 = vpop.permute.xlu0 %1186 }
 0x783   : > { %v1192_v53 = vsel %vm969_vm5, %v1187_v52, 0 }
 0x784   : > { %v2784_v54 = vpop.eup %2783  ;;  %2574 = vmatpush3.bf16.msra.mxu1 %v1192_v53 }
 0x785   : > { %v1182_v58 = vmul.f32 %v2784_v54, %v2780_v45  ;;  %2585 = vmatprep.subr.bf16.mxu1 %v2855_v46 }
 0x786   : > { %v1378_v23 = vpop.permute.xlu0 %1377 }
 0x787   : > { %v1184_v59 = vpack.c.bf16 %v1182_v58, %v1182_v58 }
 0x789   : > { %2576 = vmatmul.mubr.msk.bf16.vlgmr.msra.gmra.mxu1 %vm844_vm3, %v1184_v59 }
 0x78a   : > { %2587 = vmatprep.mubr.msk.bf16.mxu1 %vm2856_vm2, %v2855_v46  ;;  %2586 = vmatpush3.bf16.msra.mxu1 %v1287_v7 }
 0x78b   : > { %2597 = vmatprep.subr.bf16.mxu1 %v2855_v46 }
 0x78c   : > { %v2786_v60 = vpop.eup %2785 }
 0x78d   : > { %v1183_v63 = vmul.f32 %v2786_v60, %v2782_v48 }
 0x78f   : > { %v1185_v0 = vpack.c.bf16 %v1183_v63, %v1183_v63 }
 0x791   : > { %2582 = vmatmul.mubr.msk.bf16.vlgmr.msra.gmra.mxu0 %vm844_vm3, %v1185_v0 }
 0x792   : > { %2592 = vmatpush3.bf16.msra.mxu0 %v1334_v1  ;;  %2593 = vmatprep.mubr.msk.bf16.mxu0 %vm2856_vm2, %v2855_v46 }
 0x793   : > { %2603 = vmatprep.subr.bf16.mxu0 %v2855_v46 }
 0x799   : > { %2594 = vmatmul.mubr.msk.bf16.vlgmr.msra.gmra.mxu0 %vm844_vm3, %v1061_v17  ;;  %v1385_v17 = vsel %vm844_vm3, %v1380_v2, 0 }
 0x79a   : > { %2604 = vmatpush3.bf16.xpose.msra.mxu0 %v1435_v4  ;;  %2605 = vmatprep.mubr.msk.bf16.mxu0 %vm2856_vm2, %v2855_v46 }
 0x79b   : > { %2615 = vmatprep.subr.bf16.mxu0 %v2855_v46 }
 0x7a1   : > { %2606 = vmatmul.mubr.msk.bf16.vlgmr.msra.gmra.mxu0 %vm844_vm3, %v1428_v5 }
 0x7a2   : > { %2617 = vmatprep.mubr.msk.bf16.mxu0 %vm2856_vm2, %v2855_v46 }
 0x849   : > { %v1228_v8 = vpop.f32.mrf.mxu1 }
 0x84b   : > { %v2577_v9 = vpop.f32.mrf.mxu1 }
 0x84d   : > { %v1231_v11 = vpop.f32.mrf.mxu1 }
 0x84f   : > { %v2578_v12 = vpop.f32.mrf.mxu1 }
 0x851   : > { %v1276_v13 = vpop.f32.mrf.mxu0 }
 0x852   : > { %v1282_v15 = vpack.c.bf16 %v1276_v13, %v1228_v8 }
 0x853   : > { %v2583_v16 = vpop.f32.mrf.mxu0 }
 0x854   : > { %2588 = vmatmul.mubr.msk.bf16.vlgmr.msra.gmra.mxu1 %vm844_vm3, %v1282_v15  ;;  %v827_v16 = vld [vmem:[%s2983_s19 + $0x8] sm:$0xf] }
 0x855   : > { %2598 = vmatpush3.bf16.xpose.msra.mxu1 %v1385_v17  ;;  %v1279_v18 = vpop.f32.mrf.mxu0  ;;  %2599 = vmatprep.mubr.msk.bf16.mxu1 %vm2856_vm2, %v2855_v46  ;;  %v1602_v17 = vsel %vm969_vm5, %v827_v16, 0 }
 0x856   : > { %2609 = vmatprep.subr.bf16.mxu1 %v2855_v46 }
 0x857   : > { %v2584_v20 = vpop.f32.mrf.mxu0 }
 0x859   : > { %v3216_v21 = vpop.f32.mrf.mxu0 }
 0x85b   : > { %v2595_v24 = vpop.f32.mrf.mxu0 }
 0x85c   : > { %2600 = vmatmul.mubr.msk.bf16.vlgmr.msra.gmra.mxu1 %vm844_vm3, %v1378_v23 }
 0x85d   : > { %v3219_v26 = vpop.f32.mrf.mxu0  ;;  %2611 = vmatprep.mubr.msk.bf16.mxu1 %vm2856_vm2, %v2855_v46 }
 0x85f   : > { %v2596_v27 = vpop.f32.mrf.mxu0 }
 0x861   : > { %v1471_v28 = vpop.f32.mrf.mxu0 }
 0x862   : > { %v1472_v29 = vadd.f32 %v1471_v28, %v3132_v25 }
 0x863   : > { %v2607_v30 = vpop.f32.mrf.mxu0 }
 0x864   : > { %v1480_v33 = vsel %vm844_vm3, %v1472_v29, -inf }
 0x865   : > { %1481 = vmax.xlane.f32.xlu1 %v1480_v33  ;;  %v1474_v34 = vpop.f32.mrf.mxu0 }
 0x867   : > { %v2608_v35 = vpop.f32.mrf.mxu0 }
 0x876   : > { %1549 = vrot.lane.b32.xlu1 %v3113_v14, %s2865_s28 }
 0x87a   : > { %1649 = vrot.lane.b32.xlu1 %v3110_v10, %s2866_s6 }
 0x87e   : > { %1699 = vrot.lane.b32.xlu1 %v3113_v14, %s2866_s6 }
 0x882   : > { %1697 = vrot.lane.b32.xlu1 %v3126_v22, %s2867_s26 }
 0x8ee   : > { %v1482_v36 = vpop.xlane.xlu1 %1481 }
 0x8ef   : > { %v1484_v39 = vsub.f32 %v1472_v29, %v1482_v36 }
 0x8f1   : > { %v1487_v40 = vmul.f32 1.442695, %v1484_v39 }
 0x8f2   : > { %v1550_v37 = vpop.permute.xlu1 %1549 }
 0x8f3   : > { %v1555_v38 = vsel %vm969_vm5, %v1550_v37, 0  ;;  %2787 = vpow2.f32 %v1487_v40 }
 0x8f4   : > { %2616 = vmatpush3.bf16.msra.mxu0 %v1555_v38 }
 0x8f5   : > { %2627 = vmatprep.subr.bf16.mxu0 %v2855_v46 }
 0x8f6   : > { %v1650_v1 = vpop.permute.xlu1 %1649 }
 0x8f7   : > { %v1655_v3 = vsel %vm844_vm3, %v1650_v1, 0 }
 0x8fa   : > { %v1700_v29 = vpop.permute.xlu1 %1699 }
 0x8fb   : > { %v1705_v35 = vsel %vm844_vm3, %v1700_v29, 0 }
 0x8fe   : > { %v1698_v38 = vpop.permute.xlu1 %1697 }
 0x900   : > { %v2788_v49 = vpop.eup %2787 }
 0x901   : > { %v1492_v52 = vsel %vm844_vm3, %v2788_v49, 0.0 }
 0x914   : > { %v3233_v41 = vpop.f32.mrf.mxu1 }
 0x916   : > { %v2589_v42 = vpop.f32.mrf.mxu1 }
 0x918   : > { %v3235_v43 = vpop.f32.mrf.mxu1 }
 0x91a   : > { %v2590_v44 = vpop.f32.mrf.mxu1 }
 0x91c   : > { %v1421_v45 = vpop.f32.mrf.mxu1 }
 0x91d   : > { %v1422_v47 = vadd.f32 %v1421_v45, %v3132_v25 }
 0x91e   : > { %v2601_v22 = vpop.f32.mrf.mxu1 }
 0x91f   : > { %v1477_v48 = vsel %vm844_vm3, %v1422_v47, -inf }
 0x920   : > { %1478 = vmax.xlane.f32.xlu0 %v1477_v48  ;;  %v1424_v50 = vpop.f32.mrf.mxu1 }
 0x921   : > { %v1374_v50 = vadd.f32 %v3219_v26, %v3235_v43 }
 0x922   : > { %v2602_v51 = vpop.f32.mrf.mxu1 }
 0x924   : > { %1493 = vadd.xlane.f32.xlu0 %v1492_v52 }
 0x9a9   : > { %v1479_v53 = vpop.xlane.xlu0 %1478 }
 0x9aa   : > { %v1483_v54 = vsub.f32 %v1422_v47, %v1479_v53  ;;  %v1371_v47 = vadd.f32 %v3216_v21, %v3233_v41 }
 0x9ac   : > { %v1485_v58 = vmul.f32 1.442695, %v1483_v54 }
 0x9ad   : > { %v1494_v59 = vpop.xlane.xlu0 %1493 }
 0x9ae   : > { %2789 = vpow2.f32 %v1485_v58 }
 0x9af   : > { %2791 = vrcp.f32 %v1494_v59 }
 0x9bb   : > { %v2790_v60 = vpop.eup %2789 }
 0x9bc   : > { %v2792_v62 = vpop.eup %2791  ;;  %v1489_v63 = vsel %vm844_vm3, %v2790_v60, 0.0 }
 0x9bd   : > { %1490 = vadd.xlane.f32.xlu0 %v1489_v63  ;;  %v1498_v0 = vmul.f32 %v2792_v62, %v2788_v49 }
 0x9bf   : > { %v1500_v2 = vpack.c.bf16 %v1498_v0, %v1498_v0 }
 0x9c1   : > { %2618 = vmatmul.mubr.msk.bf16.vlgmr.msra.gmra.mxu0 %vm844_vm3, %v1500_v2 }
 0x9c2   : > { %2628 = vmatpush3.bf16.xpose.msra.mxu0 %v1655_v3  ;;  %2629 = vmatprep.mubr.msk.bf16.mxu0 %vm2856_vm2, %v2855_v46 }
 0x9c3   : > { %2639 = vmatprep.subr.bf16.mxu0 %v2855_v46 }
 0x9d3   : > { %1501 = vrot.lane.b32.xlu0 %v3110_v10, %s2865_s28 }
 0x9d7   : > { %1647 = vrot.lane.b32.xlu0 %v3118_v19, %s2867_s26 }
 0xa46   : > { %v1491_v4 = vpop.xlane.xlu0 %1490 }
 0xa47   : > { %2793 = vrcp.f32 %v1491_v4 }
 0xa4a   : > { %v1502_v5 = vpop.permute.xlu0 %1501 }
 0xa4b   : > { %v1507_v6 = vsel %vm969_vm5, %v1502_v5, 0 }
 0xa4c   : > { %2610 = vmatpush3.bf16.msra.mxu1 %v1507_v6 }
 0xa4d   : > { %2621 = vmatprep.subr.bf16.mxu1 %v2855_v46 }
 0xa4e   : > { %v1648_v7 = vpop.permute.xlu0 %1647 }
 0xa4f   : > { %2630 = vmatmul.mubr.msk.bf16.vlgmr.msra.gmra.mxu0 %vm844_vm3, %v1648_v7 }
 0xa50   : > { %2641 = vmatprep.mubr.msk.bf16.mxu0 %vm2856_vm2, %v2855_v46 }
 0xa54   : > { %v2794_v8 = vpop.eup %2793 }
 0xa55   : > { %v1497_v9 = vmul.f32 %v2794_v8, %v2790_v60 }
 0xa57   : > { %v1499_v11 = vpack.c.bf16 %v1497_v9, %v1497_v9 }
 0xa59   : > { %2612 = vmatmul.mubr.msk.bf16.vlgmr.msra.gmra.mxu1 %vm844_vm3, %v1499_v11  ;;  %v828_v11 = vld [vmem:[%s2983_s19 + $0xc] sm:$0xf] }
 0xa5a   : > { %2623 = vmatprep.mubr.msk.bf16.mxu1 %vm2856_vm2, %v2855_v46  ;;  %2622 = vmatpush3.bf16.msra.mxu1 %v1602_v17 }
 0xa5b   : > { %2633 = vmatprep.subr.bf16.mxu1 %v2855_v46 }
 0xa81   : > { %v1591_v19 = vpop.f32.mrf.mxu0 }
 0xa83   : > { %v2619_v12 = vpop.f32.mrf.mxu0 }
 0xa85   : > { %v1594_v13 = vpop.f32.mrf.mxu0 }
 0xa87   : > { %v2620_v15 = vpop.f32.mrf.mxu0 }
 0xb0f   : > { %v1691_v18 = vpop.f32.mrf.mxu0 }
 0xb10   : > { %v1692_v20 = vadd.f32 %v1691_v18, %v3132_v25 }
 0xb11   : > { %v2631_v23 = vpop.f32.mrf.mxu0 }
 0xb12   : > { %v1747_v24 = vsel %vm844_vm3, %v1692_v20, -inf }
 0xb13   : > { %1748 = vmax.xlane.f32.xlu0 %v1747_v24  ;;  %v1694_v27 = vpop.f32.mrf.mxu0 }
 0xb14   : > { %v1919_v27 = vsub.s32 2, %v3089_v55 }
 0xb15   : > { %v2632_v28 = vpop.f32.mrf.mxu0 }
 0xb16   : > { %v1925_v28 = vsub.s32 3, %v3089_v55  ;;  %v1920_v29 = vrot.slane %v3093_v57, %v1919_v27 }
 0xb19   : > { %v1543_v30 = vpop.f32.mrf.mxu1 }
 0xb1a   : > { %v1597_v33 = vpack.c.bf16 %v1591_v19, %v1543_v30  ;;  %v1872_v19 = vsel %vm969_vm5, %v828_v11, 0 }
 0xb1b   : > { %v2613_v34 = vpop.f32.mrf.mxu1 }
 0xb1c   : > { %2624 = vmatmul.mubr.msk.bf16.vlgmr.msra.gmra.mxu1 %vm844_vm3, %v1597_v33  ;;  %v1926_v34 = vrot.slane %v3093_v57, %v1925_v28 }
 0xb1d   : > { %2634 = vmatpush3.bf16.xpose.msra.mxu1 %v1705_v35  ;;  %v1546_v36 = vpop.f32.mrf.mxu1  ;;  %2635 = vmatprep.mubr.msk.bf16.mxu1 %vm2856_vm2, %v2855_v46 }
 0xb1e   : > { %2645 = vmatprep.subr.bf16.mxu1 %v2855_v46 }
 0xb1f   : > { %v2614_v37 = vpop.f32.mrf.mxu1 }
 0xb24   : > { %2636 = vmatmul.mubr.msk.bf16.vlgmr.msra.gmra.mxu1 %vm844_vm3, %v1698_v38 }
 0xb25   : > { %2647 = vmatprep.mubr.msk.bf16.mxu1 %vm2856_vm2, %v2855_v46 }
 0xb9c   : > { %v1749_v39 = vpop.xlane.xlu0 %1748 }
 0xb9d   : > { %v1753_v40 = vsub.f32 %v1692_v20, %v1749_v39 }
 0xb9f   : > { %v1755_v42 = vmul.f32 1.442695, %v1753_v40 }
 0xba1   : > { %2795 = vpow2.f32 %v1755_v42 }
 0xbae   : > { %v2796_v44 = vpop.eup %2795 }
 0xbaf   : > { %v1759_v45 = vsel %vm844_vm3, %v2796_v44, 0.0 }
 0xbb0   : > { %1760 = vadd.xlane.f32.xlu0 %v1759_v45 }
 0xbdc   : > { %v1638_v22 = vpop.f32.mrf.mxu1 }
 0xbdd   : > { %v3274_v48 = vadd.f32 %v1638_v22, %v1371_v47 }
 0xbde   : > { %v2625_v49 = vpop.f32.mrf.mxu1 }
 0xbe0   : > { %v1641_v51 = vpop.f32.mrf.mxu1 }
 0xbe1   : > { %v3278_v52 = vadd.f32 %v1641_v51, %v1374_v50 }
 0xbe2   : > { %v2626_v53 = vpop.f32.mrf.mxu1 }
 0xbe4   : > { %v1741_v54 = vpop.f32.mrf.mxu1 }
 0xbe5   : > { %v1742_v58 = vadd.f32 %v1741_v54, %v3132_v25 }
 0xbe6   : > { %v2637_v59 = vpop.f32.mrf.mxu1 }
 0xbe7   : > { %v1750_v60 = vsel %vm844_vm3, %v1742_v58, -inf }
 0xbe8   : > { %1751 = vmax.xlane.f32.xlu1 %v1750_v60  ;;  %v1744_v62 = vpop.f32.mrf.mxu1  ;;  %v2757_v60 = vld [vmem:[%s2988_s25 + $0x8] sm:$0xff]  }
 0xbe9   : > { %v2758_v62 = vld [vmem:[%s2988_s25] sm:$0xff]  }
 0xbea   : > { %v2638_v21 = vpop.f32.mrf.mxu1 }
 0xbf9   : > { %1819 = vrot.lane.b32.xlu1 %v3113_v14, %s2868_s13 }
 0xc39   : > { %v1761_v2 = vpop.xlane.xlu0 %1760 }
 0xc71   : > { %v1752_v41 = vpop.xlane.xlu1 %1751 }
 0xc72   : > { %v1754_v63 = vsub.f32 %v1742_v58, %v1752_v41 }
 0xc74   : > { %v1757_v0 = vmul.f32 1.442695, %v1754_v63 }
 0xc75   : > { %v1820_v26 = vpop.permute.xlu1 %1819 }
 0xc76   : > { %2797 = vpow2.f32 %v1757_v0  ;;  %v1825_v43 = vsel %vm969_vm5, %v1820_v26, 0 }
 0xc77   : > { %2646 = vmatpush3.bf16.msra.mxu1 %v1825_v43  ;;  %2799 = vrcp.f32 %v1761_v2 }
 0xc78   : > { %2657 = vmatprep.subr.bf16.mxu1 %v2855_v46 }
 0xc83   : > { %v2798_v25 = vpop.eup %2797 }
 0xc84   : > { %v1762_v1 = vsel %vm844_vm3, %v2798_v25, 0.0  ;;  %v2800_v3 = vpop.eup %2799 }
 0xc85   : > { %1763 = vadd.xlane.f32.xlu0 %v1762_v1  ;;  %v1767_v4 = vmul.f32 %v2800_v3, %v2796_v44 }
 0xc87   : > { %v1769_v7 = vpack.c.bf16 %v1767_v4, %v1767_v4 }
 0xc9b   : > { %1771 = vrot.lane.b32.xlu0 %v3110_v10, %s2868_s13 }
 0xd0e   : > { %v1764_v14 = vpop.xlane.xlu0 %1763 }
 0xd0f   : > { %2801 = vrcp.f32 %v1764_v14  ;;  %v1965_v14 = vsub.s32 5, %v3089_v55 }
 0xd12   : > { %v1772_v5 = vpop.permute.xlu0 %1771 }
 0xd13   : > { %v1777_v6 = vsel %vm969_vm5, %v1772_v5, 0 }
 0xd14   : > { %2640 = vmatpush3.bf16.msra.mxu0 %v1777_v6 }
 0xd15   : > { %2651 = vmatprep.subr.bf16.mxu0 %v2855_v46 }
 0xd17   : > { %2642 = vmatmul.mubr.msk.bf16.vlgmr.msra.gmra.mxu0 %vm844_vm3, %v1769_v7  ;;  %v1966_v7 = vrot.slane %v3093_v57, %v1965_v14 }
 0xd18   : > { %2653 = vmatprep.mubr.msk.bf16.mxu0 %vm2856_vm2, %v2855_v46  ;;  %2652 = vmatpush3.bf16.msra.mxu0 %v1872_v19  ;;  %v2759_v19 = vld [vmem:[%s2998_s15 + $0x38] sm:$0xff]  }
 0xd19   : > { %2665 = vmatprep.subr.bf16.mxu0 %v2855_v46 }
 0xd1c   : > { %v2802_v10 = vpop.eup %2801 }
 0xd1d   : > { %v1768_v8 = vmul.f32 %v2802_v10, %v2798_v25  ;;  %v1959_v25 = vsub.s32 4, %v3089_v55 }
 0xd1f   : > { %v1770_v9 = vpack.c.bf16 %v1768_v8, %v1768_v8  ;;  %v1960_v3 = vrot.slane %v3093_v57, %v1959_v25 }
 0xd21   : > { %2648 = vmatmul.mubr.msk.bf16.vlgmr.msra.gmra.mxu1 %vm844_vm3, %v1770_v9 }
 0xd22   : > { %2661 = vmatprep.mubr.msk.bf16.mxu1 %vm2856_vm2, %v2855_v46  ;;  %2658 = vmatpush3.bf16.msra.mxu1 %v2757_v60 }
 0xd23   : > { %2659 = vmatprep.subr.bf16.mxu1 %v2855_v46 }
 0xd26   : > { %2660 = vmatpush3.bf16.msra.mxu1 %v2758_v62 }
 0xdd7   : > { %v1813_v12 = vpop.f32.mrf.mxu0 }
 0xdd9   : > { %v2643_v13 = vpop.f32.mrf.mxu0 }
 0xdda   : > { %v2761_v13 = vld [vmem:[%s2998_s15 + $0x28] sm:$0xff]  }
 0xddb   : > { %v1816_v15 = vpop.f32.mrf.mxu0 }
 0xddc   : > { %v2762_v15 = vld [vmem:[%s2998_s15 + $0x20] sm:$0xff]  }
 0xddd   : > { %v2644_v16 = vpop.f32.mrf.mxu0 }
 0xdde   : > { %v2763_v16 = vld [vmem:[%s2998_s15 + $0x18] sm:$0xff]  }
 0xde1   : > { %v1861_v17 = vpop.f32.mrf.mxu1 }
 0xde2   : > { %v1867_v18 = vpack.c.bf16 %v1861_v17, %v1813_v12  ;;  %v2760_v12 = vld [vmem:[%s2998_s15 + $0x30] sm:$0xff]  }
 0xde3   : > { %v2649_v20 = vpop.f32.mrf.mxu1  ;;  %v2764_v17 = vld [vmem:[%s2998_s15 + $0x10] sm:$0xff]  }
 0xde4   : > { %2654 = vmatmul.mubr.msk.bf16.vlgmr.msra.gmra.mxu0 %vm844_vm3, %v1867_v18  ;;  %v2765_v18 = vld [vmem:[%s2998_s15 + $0x8] sm:$0xff]   ;;  %v2766_v20 = vld [vmem:[%s2998_s15] sm:$0xff]  }
 0xde5   : > { %v1864_v23 = vpop.f32.mrf.mxu1  ;;  %2681 = vmatprep.mubr.msk.bf16.mxu0 %vm2856_vm2, %v2855_v46  ;;  %2666 = vmatpush3.bf16.msra.mxu0 %v2759_v19 }
 0xde6   : > { %2667 = vmatprep.subr.bf16.mxu0 %v2855_v46  ;;  %v2427_v23 = vld [vmem:[%s509_s12] ss:$0 sm:$0xff] }
 0xde7   : > { %v2650_v24 = vpop.f32.mrf.mxu1 }
 0xde9   : > { %2668 = vmatpush3.bf16.msra.mxu0 %v2760_v12 }
 0xdea   : > { %2669 = vmatprep.subr.bf16.mxu0 %v2855_v46 }
 0xded   : > { %2670 = vmatpush3.bf16.msra.mxu0 %v2761_v13 }
 0xdee   : > { %2671 = vmatprep.subr.bf16.mxu0 %v2855_v46 }
 0xdf1   : > { %2672 = vmatpush3.bf16.msra.mxu0 %v2762_v15 }
 0xdf2   : > { %2673 = vmatprep.subr.bf16.mxu0 %v2855_v46 }
 0xdf5   : > { %2674 = vmatpush3.bf16.msra.mxu0 %v2763_v16 }
 0xdf6   : > { %2675 = vmatprep.subr.bf16.mxu0 %v2855_v46 }
 0xdf9   : > { %2676 = vmatpush3.bf16.msra.mxu0 %v2764_v17 }
 0xdfa   : > { %2677 = vmatprep.subr.bf16.mxu0 %v2855_v46 }
 0xdfd   : > { %2678 = vmatpush3.bf16.msra.mxu0 %v2765_v18 }
 0xdfe   : > { %2679 = vmatprep.subr.bf16.mxu0 %v2855_v46 }
 0xe01   : > { %2680 = vmatpush3.bf16.msra.mxu0 %v2766_v20 }
 0xea4   : > { %v1908_v30 = vpop.f32.mrf.mxu0 }
 0xea5   : > { %v1915_v33 = vadd.f32 %v1908_v30, %v3274_v48 }
 0xea6   : > { %v2655_v35 = vpop.f32.mrf.mxu0 }
 0xea7   : > { %v1921_v36 = vadd.f32 %v1920_v29, %v1915_v33 }
 0xea8   : > { %v1911_v37 = vpop.f32.mrf.mxu0 }
 0xea9   : > { %v1927_v38 = vmul.f32 %v1926_v34, %v1921_v36  ;;  %v1916_v39 = vadd.f32 %v1911_v37, %v3278_v52 }
 0xeaa   : > { %v2656_v40 = vpop.f32.mrf.mxu0 }
 0xeab   : > { %v1922_v42 = vadd.f32 %v1920_v29, %v1916_v39  ;;  %v3308_v44 = vadd.f32 %v1927_v38, %v3067_v31 }
 0xead   : > { %v1928_v45 = vmul.f32 %v1926_v34, %v1922_v42  ;;  %v1931_v47 = vsel %vm713_vm1, %v3308_v44, 0.0 }
 0xeae   : > { %1932 = vadd.xlane.f32.xlu1 %v1931_v47 }
 0xeaf   : > { %v3313_v22 = vadd.f32 %v1928_v45, %v3069_v32 }
 0xeb1   : > { %v1934_v48 = vsel %vm713_vm1, %v3313_v22, 0.0 }
 0xeb2   : > { %1935 = vadd.xlane.f32.xlu0 %v1934_v48 }
 0xf37   : > { %v1933_v49 = vpop.xlane.xlu1 %1932 }
 0xf38   : > { %v1937_v50 = vmul.f32 0.03125, %v1933_v49 }
 0xf3a   : > { %v1939_v51 = vsub.f32 %v3308_v44, %v1937_v50 }
 0xf3b   : > { %v1936_v31 = vpop.xlane.xlu0 %1935 }
 0xf3c   : > { %v1938_v52 = vmul.f32 0.03125, %v1936_v31  ;;  %v1941_v53 = vmul.f32 %v1939_v51, %v1939_v51 }
 0xf3e   : > { %v1940_v54 = vsub.f32 %v3313_v22, %v1938_v52  ;;  %v1943_v58 = vsel %vm713_vm1, %v1941_v53, 0.0 }
 0xf3f   : > { %1944 = vadd.xlane.f32.xlu0 %v1943_v58  ;;  %v2074_v58 = vsub.s32 6, %v3089_v55 }
 0xf40   : > { %v1942_v59 = vmul.f32 %v1940_v54, %v1940_v54 }
 0xf42   : > { %v1946_v32 = vsel %vm713_vm1, %v1942_v59, 0.0  ;;  %v2167_v59 = vsub.s32 7, %v3089_v55 }
 0xf43   : > { %1947 = vadd.xlane.f32.xlu1 %v1946_v32  ;;  %v2075_v32 = vrot.slane %v3093_v57, %v2074_v58 }
 0xf44   : > { %v2168_v60 = vrot.slane %v3093_v57, %v2167_v59 }
 0xfc8   : > { %v1945_v21 = vpop.xlane.xlu0 %1944 }
 0xfc9   : > { %v1949_v41 = vmul.f32 0.03125, %v1945_v21 }
 0xfcb   : > { %v1951_v63 = vadd.f32 1e-06, %v1949_v41 }
 0xfcc   : > { %v1948_v0 = vpop.xlane.xlu1 %1947 }
 0xfcd   : > { %2803 = vrsqrt.f32 %v1951_v63  ;;  %v1950_v26 = vmul.f32 0.03125, %v1948_v0 }
 0xfcf   : > { %v1952_v43 = vadd.f32 1e-06, %v1950_v26 }
 0xfd1   : > { %2805 = vrsqrt.f32 %v1952_v43 }
 0xfda   : > { %v2804_v1 = vpop.eup %2803 }
 0xfdb   : > { %v1955_v2 = vmul.f32 %v2804_v1, %v1939_v51 }
 0xfdd   : > { %v1961_v6 = vmul.f32 %v1960_v3, %v1955_v2 }
 0xfde   : > { %v2806_v4 = vpop.eup %2805 }
 0xfdf   : > { %v1956_v5 = vmul.f32 %v2806_v4, %v1940_v54  ;;  %v1967_v8 = vadd.f32 %v1966_v7, %v1961_v6 }
 0xfe1   : > { %v1962_v10 = vmul.f32 %v1960_v3, %v1956_v5 }
 0xfe3   : > { %v1968_v9 = vadd.f32 %v1966_v7, %v1962_v10 }
 0xfe5   : > { %v1969_v11 = vpack.c.bf16 %v1968_v9, %v1967_v8 }
 0xfe7   : > { %2662 = vmatmul.mubr.msk.bf16.vlgmr.msra.gmra.mxu1 %vm713_vm1, %v1969_v11 }
0x10a7   : > { %v2030_v24 = vpop.f32.mrf.mxu1 }
0x10a8   : > { %v2031_v27 = vadd.f32 %v2427_v23, %v2030_v24 }
0x10a9   : > { %v2663_v28 = vpop.f32.mrf.mxu1 }
0x10aa   : > { %v2037_v29 = vmul.f32 %v2031_v27, %v2031_v27 }
0x10ab   : > { %v2033_v30 = vpop.f32.mrf.mxu1 }
0x10ac   : > { %v2039_v33 = vmul.f32 %v2037_v29, %v2031_v27  ;;  %v2034_v34 = vadd.f32 %v2427_v23, %v2033_v30 }
0x10ad   : > { %v2664_v35 = vpop.f32.mrf.mxu1 }
0x10ae   : > { %v2041_v36 = vmul.f32 0.044715, %v2039_v33  ;;  %v2038_v37 = vmul.f32 %v2034_v34, %v2034_v34 }
0x10b0   : > { %v2043_v38 = vadd.f32 %v2041_v36, %v2031_v27  ;;  %v2040_v39 = vmul.f32 %v2038_v37, %v2034_v34 }
0x10b2   : > { %v2045_v46 = vmul.f32 0.7978846, %v2043_v38  ;;  %v2042_v40 = vmul.f32 0.044715, %v2040_v39 }
0x10b4   : > { %2807 = vtanh.f32 %v2045_v46  ;;  %v2044_v42 = vadd.f32 %v2042_v40, %v2034_v34 }
0x10b6   : > { %v2046_v45 = vmul.f32 0.7978846, %v2044_v42 }
0x10b8   : > { %2809 = vtanh.f32 %v2046_v45 }
0x10c1   : > { %v2808_v47 = vpop.eup %2807 }
0x10c2   : > { %v2049_v48 = vadd.f32 1.0, %v2808_v47 }
0x10c4   : > { %v2051_v50 = vmul.f32 0.5, %v2049_v48 }
0x10c5   : > { %v2810_v49 = vpop.eup %2809 }
0x10c6   : > { %v2050_v51 = vadd.f32 1.0, %v2810_v49  ;;  %v2053_v52 = vmul.f32 %v2051_v50, %v2031_v27 }
0x10c8   : > { %v2052_v31 = vmul.f32 0.5, %v2050_v51 }
0x10ca   : > { %v2054_v53 = vmul.f32 %v2052_v31, %v2034_v34 }
0x10cc   : > { %v2055_v54 = vpack.c.bf16 %v2054_v53, %v2053_v52 }
0x10ce   : > { %2682 = vmatmul.mubr.bf16.vlgmr.msra.gmra.mxu0 %v2055_v54 }
0x118e   : > { %v2158_v62 = vpop.f32.mrf.mxu0 }
0x118f   : > { %v2159_v21 = vadd.f32 %v2158_v62, %v2075_v32 }
0x1190   : > { %v2683_v41 = vpop.f32.mrf.mxu0 }
0x1191   : > { %v2169_v63 = vmul.f32 %v2168_v60, %v2159_v21 }
0x1192   : > { %v2161_v0 = vpop.f32.mrf.mxu0 }
0x1193   : > { %v2171_v26 = vadd.f32 %v2169_v63, %v3308_v44  ;;  %v2162_v43 = vadd.f32 %v2161_v0, %v2075_v32 }
0x1194   : > { %v2684_v25 = vpop.f32.mrf.mxu0 }
0x1195   : > { %2173 = vst.msk [vmem:[#allocation2] sm:$0xff] %vm713_vm1, %v2171_v26  ;;  %v2170_v1 = vmul.f32 %v2168_v60, %v2162_v43  ;;  %2178 = sbr.rel (%p2439_p8) target bundleno = 4819 (0x12d3), region = 72 }
0x1197   : > { %v2172_v2 = vadd.f32 %v2170_v1, %v3313_v22 }
0x1199   : > { %2174 = vst.msk [vmem:[#allocation2 + $0x8] sm:$0xff] %vm713_vm1, %v2172_v2 }
0x119a   : > { %v2180_v57 = vsel %vm713_vm1, %v2171_v26, 0.0  ;;  %v2183_v3 = vsel %vm713_vm1, %v2172_v2, 0.0  ;;  %v2179_v17 = vld [vmem:[%s3391_s3] sm:$0x3] }
0x119b   : > { %2181 = vadd.xlane.f32.xlu0 %v2180_v57  ;;  %v2209_v18 = vrot.slane %v2179_v17, %v743_v56  ;;  %v2215_v24 = vrot.slane %v2179_v17, %v749_v61 }
0x119f   : > { %2184 = vadd.xlane.f32.xlu0 %v2183_v3 }
0x1224   : > { %v2182_v14 = vpop.xlane.xlu0 %2181 }
0x1225   : > { %v2186_v44 = vmul.f32 0.03125, %v2182_v14 }
0x1227   : > { %v2188_v4 = vsub.f32 %v2171_v26, %v2186_v44 }
0x1228   : > { %v2185_v5 = vpop.xlane.xlu0 %2184 }
0x1229   : > { %v2187_v6 = vmul.f32 0.03125, %v2185_v5  ;;  %v2190_v7 = vmul.f32 %v2188_v4, %v2188_v4 }
0x122b   : > { %v2189_v10 = vsub.f32 %v2172_v2, %v2187_v6  ;;  %v2192_v22 = vsel %vm713_vm1, %v2190_v7, 0.0 }
0x122c   : > { %2193 = vadd.xlane.f32.xlu1 %v2192_v22 }
0x122d   : > { %v2191_v8 = vmul.f32 %v2189_v10, %v2189_v10 }
0x122f   : > { %v2195_v9 = vsel %vm713_vm1, %v2191_v8, 0.0 }
0x1230   : > { %2196 = vadd.xlane.f32.xlu1 %v2195_v9 }
0x12b5   : > { %v2194_v11 = vpop.xlane.xlu1 %2193 }
0x12b6   : > { %v2198_v19 = vmul.f32 0.03125, %v2194_v11 }
0x12b8   : > { %v2200_v12 = vadd.f32 1e-06, %v2198_v19 }
0x12b9   : > { %v2197_v13 = vpop.xlane.xlu1 %2196 }
0x12ba   : > { %2811 = vrsqrt.f32 %v2200_v12  ;;  %v2199_v15 = vmul.f32 0.03125, %v2197_v13 }
0x12bc   : > { %v2201_v16 = vadd.f32 1e-06, %v2199_v15 }
0x12be   : > { %2813 = vrsqrt.f32 %v2201_v16 }
0x12c7   : > { %v2812_v20 = vpop.eup %2811 }
0x12c8   : > { %v2204_v23 = vmul.f32 %v2812_v20, %v2188_v4 }
0x12ca   : > { %v2210_v27 = vmul.f32 %v2209_v18, %v2204_v23 }
0x12cb   : > { %v2814_v28 = vpop.eup %2813 }
0x12cc   : > { %v2216_v29 = vadd.f32 %v2215_v24, %v2210_v27  ;;  %v2205_v30 = vmul.f32 %v2814_v28, %v2189_v10 }
0x12ce   : > { %2218 = vst.msk [vmem:[%s3009_s30] sm:$0xff] %vm713_vm1, %v2216_v29  ;;  %v2211_v33 = vmul.f32 %v2209_v18, %v2205_v30 }
0x12d0   : > { %v2217_v34 = vadd.f32 %v2215_v24, %v2211_v33 }
0x12d2   : > { %2219 = vst.msk [vmem:[%s3009_s30 + $0x8] sm:$0xff] %vm713_vm1, %v2217_v34 }
0x12d3 PF: > { %s3415_s12 = sld [smem:[#allocation5_spill]] }
0x12d4   : > { %s3416_s17 = sld [smem:[#allocation3_spill]] }
0x12d5   : > { %s3417_s18 = sld [smem:[#allocation4_spill]] }
0x12d6   : > { %s3418_s19 = sld [smem:[#allocation6_spill]] }
0x12d7   : > { %s3419_s20 = sld [smem:[#allocation7_spill]] }
0x12d9   : > { %s21_s21 = sadd.s32 1, %s3415_s12  }
0x12da   : > { %p18_p9 = scmp.ge.s32.totalorder %s21_s21, 6  }
0x12dc   :  { %20 = sbr.rel (!%p18_p9) target bundleno = 4 (0x4), region = 123 }

</bundles_post_ra>
